<compile_context>
chip_gen: v6e
topology: v6e:2x2x1
jax: 0.10.0
libtpu: 0.0.40
codegen_flags: <defaults>
</compile_context>

<pallas_src>
import math
import functools
import numpy as np
import jax
import jax.numpy as jnp
from jax.experimental import pallas as pl
from jax.experimental.pallas import tpu as pltpu


def _round_up(x, m):
    return (x + m - 1) // m * m


# ============================================================================
# Pallas kernel 1: tiled matmul (bf16 operands, f32 accumulate, fused bias +
# optional ReLU epilogue)
# ============================================================================

def _matmul_bias_kernel(a_ref, b_ref, bias_ref, o_ref, acc_ref, *, apply_relu):
    @pl.when(pl.program_id(2) == 0)
    def _():
        acc_ref[...] = jnp.zeros_like(acc_ref)

    acc_ref[...] += jnp.dot(a_ref[...], b_ref[...],
                            preferred_element_type=jnp.float32)

    @pl.when(pl.program_id(2) == pl.num_programs(2) - 1)
    def _():
        r = acc_ref[...] + bias_ref[...]
        if apply_relu:
            r = jnp.maximum(r, 0.0)
        o_ref[...] = r


def pallas_matmul(a, b, bias=None, relu=False):
    """a: (M, K), b: (K, N), bias: (N,) or None -> (M, N) f32 (optional ReLU)."""
    M, K = a.shape
    K2, N = b.shape
    assert K == K2
    a = a.astype(jnp.bfloat16)
    b = b.astype(jnp.bfloat16)
    if bias is None:
        bias = jnp.zeros((N,), jnp.float32)
    bias2 = bias.astype(jnp.float32).reshape(1, N)

    # Degenerate K (e.g. the 2-wide meta-network input): pad K up to 8.
    if K < 8:
        a = jnp.pad(a, ((0, 0), (0, 8 - K)))
        b = jnp.pad(b, ((0, 8 - K), (0, 0)))
        K = 8

    # Pad M to a multiple of 8 only when necessary (K, N never padded; blocks
    # equal to the full dim are always legal).
    Mp = _round_up(M, 8)
    if Mp != M:
        a = jnp.pad(a, ((0, Mp - M), (0, 0)))

    def _pick(d, opts):
        for t in opts:
            if d % t == 0:
                return t
        return d

    tm = _pick(Mp, (512, 256, 128, 64, 32, 16, 8))
    tn = N if (N % 128 != 0 or N <= 512) else _pick(N, (512, 256, 128))
    tk = K if (K % 128 != 0 or K <= 1024) else _pick(K, (512, 256, 128))

    out = pl.pallas_call(
        functools.partial(_matmul_bias_kernel, apply_relu=relu),
        out_shape=jax.ShapeDtypeStruct((Mp, N), jnp.float32),
        grid=(Mp // tm, N // tn, K // tk),
        in_specs=[pl.BlockSpec((tm, tk), lambda i, j, k: (i, k)),
                  pl.BlockSpec((tk, tn), lambda i, j, k: (k, j)),
                  pl.BlockSpec((1, tn), lambda i, j, k: (0, j))],
        out_specs=pl.BlockSpec((tm, tn), lambda i, j, k: (i, j)),
        scratch_shapes=[pltpu.VMEM((tm, tn), jnp.float32)],
        compiler_params=pltpu.CompilerParams(
            dimension_semantics=("parallel", "parallel", "arbitrary")),
    )(a, b, bias2)
    return out[:M] if Mp != M else out


# ============================================================================
# Pallas kernel 2: depthwise 3x3 conv on the VPU (no MXU, no densified weights)
# ============================================================================

def _depthwise3x3_kernel(x_ref, w_ref, b_ref, o_ref):
    _, H, W, C = o_ref.shape
    acc = jnp.zeros((H, W, C), jnp.float32)
    for a in range(3):
        for b in range(3):
            acc = acc + x_ref[0, a:a + H, b:b + W, :] * w_ref[a, b, :]
    o_ref[0] = acc + b_ref[0]


def depthwise_conv3x3(x, w_dw, bias):
    """x: (B,H,W,C); w_dw: (C,1,3,3) PyTorch groups=C layout; bias: (C,) | None."""
    B, H, W, C = x.shape
    w = jnp.transpose(w_dw[:, 0], (1, 2, 0)).astype(jnp.float32)        # (3,3,C)
    if bias is None:
        bias = jnp.zeros((C,), jnp.float32)
    b2 = bias.astype(jnp.float32).reshape(1, C)
    xp = jnp.pad(x.astype(jnp.float32), ((0, 0), (1, 1), (1, 1), (0, 0)))
    return pl.pallas_call(
        _depthwise3x3_kernel,
        out_shape=jax.ShapeDtypeStruct((B, H, W, C), jnp.float32),
        grid=(B,),
        in_specs=[pl.BlockSpec((1, H + 2, W + 2, C), lambda i: (i, 0, 0, 0)),
                  pl.BlockSpec((3, 3, C), lambda i: (0, 0, 0)),
                  pl.BlockSpec((1, C), lambda i: (0, 0))],
        out_specs=pl.BlockSpec((1, H, W, C), lambda i: (i, 0, 0, 0)),
        compiler_params=pltpu.CompilerParams(dimension_semantics=("parallel",)),
    )(xp, w, b2)


# ============================================================================
# Pallas kernel 3: batched window attention (all heads + a block of windows
# per grid step, bias/mask broadcast in-kernel, EUP reciprocals)
# ============================================================================

def _window_attn_kernel(q_ref, k_ref, v_ref, bias_ref, mask_ref, tau_ref, o_ref):
    bblk, nh, N, hd = q_ref.shape
    G = bblk * nh
    q = q_ref[...].reshape(G, N, hd)
    k = k_ref[...].reshape(G, N, hd)
    v = v_ref[...].reshape(G, N, hd)
    s = jnp.einsum('gqd,gkd->gqk', q, k, preferred_element_type=jnp.float32)
    qn2 = jnp.sum(q * q, axis=-1, keepdims=True)                 # (G, N, 1)
    kn2 = jnp.sum(k * k, axis=-1)[:, None, :]                    # (G, 1, N)
    denom = jnp.maximum(jnp.sqrt(qn2 * kn2), 1e-6)
    s = s * pl.reciprocal(denom, approx=True)
    attn = (s.reshape(bblk, nh, N, N) * tau_ref[...]
            + bias_ref[...][None] + mask_ref[...][:, None])
    m = jnp.max(attn, axis=-1, keepdims=True)
    e = jnp.exp(attn - m)
    p = e * pl.reciprocal(jnp.sum(e, axis=-1, keepdims=True), approx=True)
    out = jnp.einsum('gqk,gkd->gqd', p.reshape(G, N, N), v,
                     preferred_element_type=jnp.float32)
    o_ref[...] = out.reshape(bblk, nh, N, hd)


def pallas_window_attention(q, k, v, bias, mask, inv_tau):
    """q,k,v: (B_, nh, N, hd); bias: (nh, N, N); mask: (nW, N, N) or None;
    inv_tau: (nh, 1, 1).  Returns (B_, nh, N, hd) f32."""
    B_, nh, N, hd = q.shape
    if mask is None:
        mask = jnp.zeros((1, N, N), jnp.float32)
    nW = mask.shape[0]

    # Window-block size: keep the (bblk, nh, N, N) logits block modest, keep it
    # a divisor/multiple of nW (shift mask tiles cleanly) and leave >=2 grid
    # blocks when possible so both TensorCores get work.
    max_elems = 1 << 20
    bblk = nW
    while bblk > 1 and bblk * nh * N * N > max_elems:
        d = 2
        while bblk % d != 0:
            d += 1
        bblk //= d
    while (B_ % (bblk * 2) == 0 and (bblk * 2) % nW == 0
           and B_ // (bblk * 2) >= 2 and 2 * bblk * nh * N * N <= max_elems):
        bblk *= 2

    if bblk % nW == 0:
        mask_in = jnp.tile(mask.astype(jnp.float32), (bblk // nW, 1, 1))
        mask_spec = pl.BlockSpec((bblk, N, N), lambda b: (0, 0, 0))
    else:
        nblk = nW // bblk
        mask_in = mask.astype(jnp.float32)
        mask_spec = pl.BlockSpec((bblk, N, N), lambda b: (b % nblk, 0, 0))

    spec_qkv = pl.BlockSpec((bblk, nh, N, hd), lambda b: (b, 0, 0, 0))
    return pl.pallas_call(
        _window_attn_kernel,
        out_shape=jax.ShapeDtypeStruct((B_, nh, N, hd), jnp.float32),
        grid=(B_ // bblk,),
        in_specs=[spec_qkv, spec_qkv, spec_qkv,
                  pl.BlockSpec((nh, N, N), lambda b: (0, 0, 0)),
                  mask_spec,
                  pl.BlockSpec((nh, 1, 1), lambda b: (0, 0, 0))],
        out_specs=spec_qkv,
        compiler_params=pltpu.CompilerParams(dimension_semantics=("parallel",)),
    )(q.astype(jnp.float32), k.astype(jnp.float32), v.astype(jnp.float32),
      bias.astype(jnp.float32), mask_in, inv_tau.astype(jnp.float32))


# ============================================================================
# Pallas kernel 4: sigmoid-gated feature fusion (lane-dense, tiled)
# ============================================================================

def _gate_fuse_kernel(x_ref, c_ref, xe_ref, carry_ref):
    x = x_ref[...]
    g = 1.0 / (1.0 + jnp.exp(-x))                      # sigmoid
    xe = (1.0 + g) * x + (1.0 - g) * c_ref[...]
    xe_ref[...] = xe
    carry_ref[...] = g * xe


def pallas_gate_fuse(x_m, carry):
    """g = sigmoid(x_m); x_E = (1+g)*x_m + (1-g)*carry; new_carry = g*x_E."""
    shape = x_m.shape
    total = int(np.prod(shape))
    lane = None
    for cand in (512, 256, 1024, 128):                 # lane-dense flatten
        if total % cand == 0:
            lane = cand
            break
    if lane is None:
        lane = shape[-1]
    rows = total // lane
    if rows % 8 == 0:
        tr = 8
        for cand in (512, 256, 128, 64, 32, 16, 8):
            if rows % cand == 0:
                tr = cand
                break
    else:
        tr = rows
    x2 = x_m.reshape(rows, lane).astype(jnp.float32)
    c2 = carry.reshape(rows, lane).astype(jnp.float32)
    xe, nc = pl.pallas_call(
        _gate_fuse_kernel,
        out_shape=(jax.ShapeDtypeStruct((rows, lane), jnp.float32),
                   jax.ShapeDtypeStruct((rows, lane), jnp.float32)),
        grid=(rows // tr,),
        in_specs=[pl.BlockSpec((tr, lane), lambda i: (i, 0))] * 2,
        out_specs=(pl.BlockSpec((tr, lane), lambda i: (i, 0)),
                   pl.BlockSpec((tr, lane), lambda i: (i, 0))),
        compiler_params=pltpu.CompilerParams(dimension_semantics=("parallel",)),
    )(x2, c2)
    return xe.reshape(shape), nc.reshape(shape)


# ============================================================================
# JAX glue: conv (im2col -> pallas matmul), grouped conv, transposed conv,
# norms, pooling, window helpers
# TODO(synk): GroupNorm/LayerNorm reductions, reflection padding and the 3x3
#             avg-pool token mixer stay as plain-JAX glue (small).
# ============================================================================

def _gelu(x):
    return jax.nn.gelu(x, approximate=False)            # matches torch.nn.GELU


def conv2d(x, w, b=None, stride=1, padding=0, relu=False):
    """x: (B,H,W,Cin) NHWC, w: (Cout,Cin,kh,kw) -> (B,Ho,Wo,Cout)."""
    Cout, Cin, kh, kw = w.shape
    if padding > 0:
        x = jnp.pad(x, ((0, 0), (padding, padding), (padding, padding), (0, 0)))
    B, Hp, Wp, C = x.shape
    w2d = jnp.transpose(w, (2, 3, 1, 0)).reshape(kh * kw * Cin, Cout)
    if kh == 1 and kw == 1 and stride == 1:              # 1x1 conv == matmul
        y = pallas_matmul(x.reshape(B * Hp * Wp, C), w2d, b, relu=relu)
        return y.reshape(B, Hp, Wp, Cout)
    Ho = (Hp - kh) // stride + 1
    Wo = (Wp - kw) // stride + 1
    # TODO(synk): fuse the im2col below into the matmul kernel (shifted pl.ds
    # reads of an NHWC VMEM tile) to avoid materializing the patches in HBM.
    cols = []
    for i in range(kh):
        for j in range(kw):
            cols.append(x[:, i:i + stride * (Ho - 1) + 1:stride,
                          j:j + stride * (Wo - 1) + 1:stride, :])
    patches = jnp.stack(cols, axis=3).astype(jnp.bfloat16)      # (B,Ho,Wo,kk,C)
    patches = patches.reshape(B * Ho * Wo, kh * kw * C)
    y = pallas_matmul(patches, w2d, b, relu=relu)
    return y.reshape(B, Ho, Wo, Cout)


def grouped_conv3x3(x, w_g, bias, groups):
    """PyTorch Conv2d(k=3, padding=1, groups=groups); w_g: (Cout, Cin//g, 3, 3)."""
    Cout, cpg, _, _ = w_g.shape
    Cin = x.shape[-1]
    if cpg == 1 and Cout == Cin:                         # depthwise -> VPU kernel
        return depthwise_conv3x3(x, w_g, bias)
    # TODO(synk): single grouped-matmul kernel (grid over groups) instead of a loop.
    opg = Cout // groups
    outs = []
    for g in range(groups):
        bg = None if bias is None else bias[g * opg:(g + 1) * opg]
        outs.append(conv2d(x[..., g * cpg:(g + 1) * cpg],
                           w_g[g * opg:(g + 1) * opg], bg, stride=1, padding=1))
    return jnp.concatenate(outs, axis=-1)


def conv_transpose2d(x, w_t, b, relu=False):
    """PyTorch ConvTranspose2d(k=3, stride=2, padding=1, output_padding=1) via
    sub-pixel decomposition (no zero-stuffed input).  The four sub-pixel
    outputs are interleaved with a stack+reshape (no scatter).
    w_t: (Cin, Cout, 3, 3).  ReLU (if requested) commutes with interleaving,
    so it is fused into each sub-conv's matmul epilogue."""
    B, H, W, _ = x.shape
    Cout = w_t.shape[1]
    wc = jnp.transpose(w_t[:, :, ::-1, ::-1], (1, 0, 2, 3))   # forward-conv kernel
    xe = jnp.pad(x, ((0, 0), (0, 1), (0, 1), (0, 0)))
    y00 = conv2d(x, wc[:, :, 1:2, 1:2], b, relu=relu)                 # tap (1,1)
    y01 = conv2d(xe[:, :H, :, :], wc[:, :, 1:2, 0::2], b, relu=relu)  # taps (1,0),(1,2)
    y10 = conv2d(xe[:, :, :W, :], wc[:, :, 0::2, 1:2], b, relu=relu)  # taps (0,1),(2,1)
    y11 = conv2d(xe, wc[:, :, 0::2, 0::2], b, relu=relu)              # taps (0/2, 0/2)
    row0 = jnp.stack([y00, y01], axis=3)                   # (B,H,W,2,C) even rows
    row1 = jnp.stack([y10, y11], axis=3)                   # odd rows
    out = jnp.stack([row0, row1], axis=2)                  # (B,H,2,W,2,C)
    return out.reshape(B, 2 * H, 2 * W, Cout)


def linear(x2d, w, b, relu=False):
    return pallas_matmul(x2d, w.T, b, relu=relu)


def bn_fold(w, b, gamma, beta, out_axis=0, eps=1e-5):
    """Fold eval-mode BatchNorm2d (fresh running stats mean=0 / var=1) into the
    preceding conv: BN(conv(x; w, b)) == conv(x; w*s, b*s + beta)."""
    s = gamma / jnp.sqrt(1.0 + eps)
    shape = [1] * w.ndim
    shape[out_axis] = -1
    wf = w * s.reshape(shape)
    b0 = jnp.zeros_like(beta) if b is None else b
    return wf, b0 * s + beta


def groupnorm1(x, gamma, beta, eps=1e-5):
    mean = jnp.mean(x, axis=(1, 2, 3), keepdims=True)
    var = jnp.mean((x - mean) ** 2, axis=(1, 2, 3), keepdims=True)
    return (x - mean) / jnp.sqrt(var + eps) * gamma + beta


def layernorm(x, gamma, beta, eps=1e-5):
    mean = jnp.mean(x, axis=-1, keepdims=True)
    var = jnp.mean((x - mean) ** 2, axis=-1, keepdims=True)
    return (x - mean) / jnp.sqrt(var + eps) * gamma + beta


def avgpool3_minus_x(x):
    # AvgPool2d(3, stride=1, padding=1, count_include_pad=False)(x) - x
    s = jax.lax.reduce_window(x, 0.0, jax.lax.add, (1, 3, 3, 1), (1, 1, 1, 1), 'SAME')
    ones = jnp.ones_like(x[..., :1])
    cnt = jax.lax.reduce_window(ones, 0.0, jax.lax.add, (1, 3, 3, 1), (1, 1, 1, 1), 'SAME')
    return s / cnt - x


def window_partition(x, ws):
    B, H, W, C = x.shape
    x = x.reshape(B, H // ws, ws, W // ws, ws, C)
    return x.transpose(0, 1, 3, 2, 4, 5).reshape(-1, ws, ws, C)


def window_reverse(windows, ws, H, W):
    B = windows.shape[0] // (H * W // ws // ws)
    x = windows.reshape(B, H // ws, W // ws, ws, ws, -1)
    return x.transpose(0, 1, 3, 2, 4, 5).reshape(B, H, W, -1)


def _np_window_partition(x, ws):
    B, H, W, C = x.shape
    x = x.reshape(B, H // ws, ws, W // ws, ws, C)
    return x.transpose(0, 1, 3, 2, 4, 5).reshape(-1, ws, ws, C)


def make_attn_mask(H, W, ws, ss):
    img = np.zeros((1, H, W, 1), np.float32)
    h_slices = (slice(0, -ws), slice(-ws, -ss), slice(-ss, None))
    w_slices = (slice(0, -ws), slice(-ws, -ss), slice(-ss, None))
    cnt = 0
    for hs in h_slices:
        for wsl in w_slices:
            img[:, hs, wsl, :] = cnt
            cnt += 1
    mw = _np_window_partition(img, ws).reshape(-1, ws * ws)
    am = mw[:, None, :] - mw[:, :, None]
    am = np.where(am != 0, -100.0, 0.0).astype(np.float32)
    return jnp.asarray(am)                               # (nW, N, N)


def make_rel_coords_log(ws):
    coords = np.stack(np.meshgrid(np.arange(ws), np.arange(ws), indexing='ij'))
    cf = coords.reshape(2, -1)
    rel = cf[:, :, None] - cf[:, None, :]
    rel = rel.transpose(1, 2, 0).reshape(-1, 2).astype(np.float32)
    return np.sign(rel) * np.log1p(np.abs(rel))          # (N*N, 2)


# ============================================================================
# Parameter initialization (deterministic, synthetic)
# ============================================================================

class _KeyGen:
    def __init__(self, seed):
        self._key = jax.random.PRNGKey(seed)

    def __call__(self):
        self._key, sub = jax.random.split(self._key)
        return sub


def _w(kg, shape, std=0.02):
    return std * jax.random.normal(kg(), shape, jnp.float32)


def _zeros(n):
    return jnp.zeros((n,), jnp.float32)


def _ones(n):
    return jnp.ones((n,), jnp.float32)


def _init_poolformer(kg, dim, mlp_ratio=4.0):
    hid = int(dim * mlp_ratio)
    return dict(gn1_w=_ones(dim), gn1_b=_zeros(dim),
                gn2_w=_ones(dim), gn2_b=_zeros(dim),
                fc1_w=_w(kg, (hid, dim, 1, 1)), fc1_b=_zeros(hid),
                fc2_w=_w(kg, (dim, hid, 1, 1)), fc2_b=_zeros(dim),
                ls1=1e-5 * _ones(dim), ls2=1e-5 * _ones(dim))


def _init_ds(kg, in_dim, out_dim):
    return dict(down_w=_w(kg, (out_dim, in_dim, 3, 3)), down_b=_zeros(out_dim),
                bn_w=_ones(out_dim), bn_b=_zeros(out_dim),
                pool=_init_poolformer(kg, out_dim))


def _init_rb(kg, dim, groups=16):
    return dict(c11_w=_w(kg, (dim, dim, 1, 1)), c11_b=_zeros(dim),
                bn1_w=_ones(dim), bn1_b=_zeros(dim),
                c33_w=_w(kg, (dim, dim // groups, 3, 3)),   # grouped, not densified
                bn2_w=_ones(dim), bn2_b=_zeros(dim))


def _init_mlpc(kg, in_f, hid):
    return dict(fc1_w=_w(kg, (hid, in_f)), fc1_b=_zeros(hid),
                conv_w=_w(kg, (hid, 1, 3, 3)),              # depthwise, not densified
                conv_b=_zeros(hid),
                fc2_w=_w(kg, (in_f, hid)), fc2_b=_zeros(in_f))


def _init_attn(kg, dim, window_size, num_heads, meta_hidden=256):
    # original WindowAttentionV2 reshape requires window_size == num_heads
    assert window_size == num_heads
    return dict(qkv_w=_w(kg, (3 * dim, dim)), qkv_b=_zeros(3 * dim),
                proj_w=_w(kg, (dim, dim)), proj_b=_zeros(dim),
                meta1_w=_w(kg, (meta_hidden, 2)), meta1_b=_zeros(meta_hidden),
                meta2_w=_w(kg, (num_heads, meta_hidden)), meta2_b=_zeros(num_heads),
                tau=_ones(num_heads),
                rel_coords_log=jnp.asarray(make_rel_coords_log(window_size)))


def _init_swin(kg, dim, input_res, num_heads, window_size, shift_size, mlp_ratio=4.0):
    H, W = input_res
    if min(input_res) <= window_size:
        shift_size = 0
        window_size = min(input_res)
    assert 0 <= shift_size < window_size
    p = dict(window_size=window_size, shift_size=shift_size, num_heads=num_heads,
             norm1_w=_ones(dim), norm1_b=_zeros(dim),
             norm2_w=_ones(dim), norm2_b=_zeros(dim),
             attn=_init_attn(kg, dim, window_size, num_heads),
             mlp=_init_mlpc(kg, dim, int(dim * mlp_ratio)))
    p['attn_mask'] = make_attn_mask(H, W, window_size, shift_size) if shift_size > 0 else None
    return p


def _init_sa2res(kg, dim, input_res, num_heads, window_size, scales):
    swin = [_init_swin(kg, dim, input_res, num_heads, window_size,
                       0 if i % 2 == 0 else window_size // 2) for i in range(2)]
    return dict(swin=swin,
                rb=_init_rb(kg, dim // scales),
                dcat_w=_w(kg, (dim // scales, dim // 2, 3, 3)),
                dcat_b=_zeros(dim // scales))


def init_restrans_en(seed, cfg):
    kg = _KeyGen(seed)
    ngf, inc, onc = cfg['ngf'], cfg['input_nc'], cfg['output_nc']
    H, W = cfg['H'], cfg['W']
    p = dict(m1_conv_w=_w(kg, (ngf, inc, 7, 7)), m1_conv_b=_zeros(ngf),
             m1_bn_w=_ones(ngf), m1_bn_b=_zeros(ngf),
             m1_pool=_init_poolformer(kg, ngf),
             ds=[_init_ds(kg, ngf, 2 * ngf), _init_ds(kg, 2 * ngf, 4 * ngf)])
    mid_res = (H // 4, W // 4)
    p['sa2res'] = [_init_sa2res(kg, 4 * ngf, mid_res, cfg['num_heads'],
                                cfg['window_size'], cfg['scales']) for _ in range(4)]
    p['us'] = [dict(w=_w(kg, (4 * ngf, 2 * ngf, 3, 3)), b=_zeros(2 * ngf),
                    bn_w=_ones(2 * ngf), bn_b=_zeros(2 * ngf)),
               dict(w=_w(kg, (2 * ngf, ngf, 3, 3)), b=_zeros(ngf),
                    bn_w=_ones(ngf), bn_b=_zeros(ngf))]
    p['m2_conv_w'] = _w(kg, (onc, ngf, 7, 7))
    p['m2_conv_b'] = _zeros(onc)
    return p


# ============================================================================
# Module forwards
# ============================================================================

def poolformer_block(x, p):
    t = avgpool3_minus_x(groupnorm1(x, p['gn1_w'], p['gn1_b']))
    x = x + p['ls1'] * t
    u = groupnorm1(x, p['gn2_w'], p['gn2_b'])
    u = conv2d(u, p['fc1_w'], p['fc1_b'])
    u = _gelu(u)
    u = conv2d(u, p['fc2_w'], p['fc2_b'])
    x = x + p['ls2'] * u
    return x


def ds_forward(x, p):
    w, b = bn_fold(p['down_w'], p['down_b'], p['bn_w'], p['bn_b'])
    x = conv2d(x, w, b, stride=2, padding=1, relu=True)   # conv+BN+ReLU fused
    return poolformer_block(x, p['pool'])


def rb_forward(x, p):
    w1, b1 = bn_fold(p['c11_w'], p['c11_b'], p['bn1_w'], p['bn1_b'])
    o1 = conv2d(x, w1, b1)                                 # 1x1 conv + BN fused
    w3, b3 = bn_fold(p['c33_w'], None, p['bn2_w'], p['bn2_b'])
    o3 = grouped_conv3x3(x, w3, b3, groups=16)             # depthwise + BN fused
    return jax.nn.relu(o1 + o3)


def mlpc_forward(x, p):
    B, HW, C = x.shape
    hid = p['fc1_b'].shape[0]
    x = linear(x.reshape(B * HW, C), p['fc1_w'], p['fc1_b'])
    x = _gelu(x)
    HH = int(math.isqrt(HW))
    x = x.reshape(B, HH, HH, hid)
    x = depthwise_conv3x3(x, p['conv_w'], p['conv_b'])
    x = _gelu(x)
    x = linear(x.reshape(B * HW, hid), p['fc2_w'], p['fc2_b'])
    return x.reshape(B, HW, C)


def window_attention_forward(xw, p, mask, num_heads):
    B_, N, C = xw.shape
    hd = C // num_heads
    qkv = linear(xw.reshape(B_ * N, C), p['qkv_w'], p['qkv_b'])
    qkv = qkv.reshape(B_, N, 3, num_heads, hd).transpose(2, 0, 3, 1, 4)
    q, k, v = qkv[0], qkv[1], qkv[2]
    # relative positional encodings (meta network) -> per-head bias (nh, N, N)
    h1 = linear(p['rel_coords_log'], p['meta1_w'], p['meta1_b'], relu=True)
    h2 = linear(h1, p['meta2_w'], p['meta2_b'])                       # (N*N, nh)
    bias = h2.T.reshape(num_heads, num_heads * num_heads, num_heads * num_heads)
    inv_tau = (1.0 / jnp.maximum(p['tau'], 0.01)).reshape(num_heads, 1, 1)
    out = pallas_window_attention(q, k, v, bias, mask, inv_tau)       # (B_,nh,N,hd)
    out = out.transpose(0, 2, 1, 3).reshape(B_ * N, C)
    out = linear(out, p['proj_w'], p['proj_b'])
    return out.reshape(B_, N, C)


def swin_block_forward(x, p, H, W):
    B, L, C = x.shape
    ws, ss, nh = p['window_size'], p['shift_size'], p['num_heads']
    shortcut = x
    xs = x.reshape(B, H, W, C)
    if ss > 0:
        xs = jnp.roll(xs, shift=(-ss, -ss), axis=(1, 2))
    xw = window_partition(xs, ws).reshape(-1, ws * ws, C)
    aw = window_attention_forward(xw, p['attn'], p['attn_mask'], nh)
    aw = aw.reshape(-1, ws, ws, C)
    xs = window_reverse(aw, ws, H, W)
    if ss > 0:
        xs = jnp.roll(xs, shift=(ss, ss), axis=(1, 2))
    x = xs.reshape(B, H * W, C)
    # post-norm ordering, exactly as in the reference module
    x = layernorm(x, p['norm1_w'], p['norm1_b'])
    x = shortcut + x
    x = x + layernorm(mlpc_forward(x, p['mlp']), p['norm2_w'], p['norm2_b'])
    return x


def sa2res_forward(x, p, scales=4):
    B, H, W, C = x.shape
    x_ = x.reshape(B, H * W, C)
    x0 = x_
    for bp in p['swin']:
        x0 = swin_block_forward(x0, bp, H, W)
    x0 = x0.reshape(B, H, W, C)
    cs = C // scales
    xs_ = [x0[..., i * cs:(i + 1) * cs] for i in range(scales)]
    xs = [x[..., i * cs:(i + 1) * cs] for i in range(scales)]

    def dcat(a):
        return conv2d(a, p['dcat_w'], p['dcat_b'], stride=1, padding=1)

    y1 = dcat(jnp.concatenate([xs_[0], xs[0]], axis=-1))
    y2 = dcat(jnp.concatenate([rb_forward(y1 + xs[1], p['rb']), xs_[1]], axis=-1))
    y3 = dcat(jnp.concatenate([rb_forward(y2 + xs[2], p['rb']), xs_[2]], axis=-1))
    y4 = dcat(jnp.concatenate([rb_forward(y3 + xs[3], p['rb']), xs_[3]], axis=-1))
    y = jnp.concatenate([y1, y2, y3, y4], axis=-1)
    return jax.nn.relu(y)


def restrans_en_forward(x_nchw, p, cfg):
    x = jnp.transpose(x_nchw, (0, 2, 3, 1)).astype(jnp.float32)   # NCHW -> NHWC
    # ---- model1: ReflectionPad(3) -> Conv7 -> BN -> ReLU -> PoolFormerBlock
    x = jnp.pad(x, ((0, 0), (3, 3), (3, 3), (0, 0)), mode='reflect')
    w1, b1 = bn_fold(p['m1_conv_w'], p['m1_conv_b'], p['m1_bn_w'], p['m1_bn_b'])
    x = conv2d(x, w1, b1, relu=True)                      # conv+BN+ReLU fused
    x = poolformer_block(x, p['m1_pool'])
    # ---- multi_feature
    x_d1 = ds_forward(x, p['ds'][0])
    x_d2 = ds_forward(x_d1, p['ds'][1])
    carry = jax.nn.sigmoid(x_d2) * x_d2          # g_d2 * x_d2
    cur = x_d2
    for i in range(4):
        x_m = sa2res_forward(cur, p['sa2res'][i], cfg['scales'])
        cur, carry = pallas_gate_fuse(x_m, carry)
    x = cur                                       # x_m4E (x_d1 unused downstream)
    # ---- model_U (ConvTranspose + BN + ReLU, all fused into the sub-convs)
    for up in p['us']:
        w, b = bn_fold(up['w'], up['b'], up['bn_w'], up['bn_b'], out_axis=1)
        x = conv_transpose2d(x, w, b, relu=True)
    # ---- model2
    x = jnp.pad(x, ((0, 0), (3, 3), (3, 3), (0, 0)), mode='reflect')
    x = conv2d(x, p['m2_conv_w'], p['m2_conv_b'])
    x = jnp.tanh(x)
    return jnp.transpose(x, (0, 3, 1, 2))         # back to NCHW


# ============================================================================
# main
# ============================================================================

if __name__ == "__main__":
    cfg = dict(input_nc=3, output_nc=3, ngf=16, H=32, W=32,
               num_heads=4, window_size=4, scales=4)
    params = init_restrans_en(seed=42, cfg=cfg)

    x = jax.random.normal(jax.random.PRNGKey(0),
                          (2, cfg['input_nc'], cfg['H'], cfg['W']), jnp.float32)
    y = restrans_en_forward(x, params, cfg)
    y = jax.block_until_ready(y)
    assert y.shape == (2, cfg['output_nc'], cfg['H'], cfg['W'])
    assert bool(jnp.all(jnp.isfinite(y)))
    print("KERNEL_OK")
</pallas_src>

<mosaic_0001>
module attributes {stable_mosaic.version = 11 : i64} {
  func.func @_matmul_bias_kernel(%arg0: i32, %arg1: i32, %arg2: i32, %arg3: memref<512x147xbf16, #tpu.memory_space<vmem>>, %arg4: memref<147x16xbf16, #tpu.memory_space<vmem>>, %arg5: memref<1x16xf32, #tpu.memory_space<vmem>>, %arg6: memref<512x16xf32, #tpu.memory_space<vmem>>, %arg7: memref<512x16xf32, #tpu.memory_space<vmem>>) attributes {dimension_semantics = [#tpu.dimension_semantics<parallel>, #tpu.dimension_semantics<parallel>, #tpu.dimension_semantics<arbitrary>], iteration_bounds = array<i64: 4, 1, 1>, scalar_prefetch = 0 : i64, scratch_operands = 1 : i64, tpu.core_type = #tpu.core_type<tc>, window_params = [{transform_indices = @transform_0, window_bounds = array<i64: 512, 147>}, {transform_indices = @transform_1, window_bounds = array<i64: 147, 16>}, {transform_indices = @transform_2, window_bounds = array<i64: 1, 16>}, {transform_indices = @transform_3, window_bounds = array<i64: 512, 16>}]} {
    %c0_i32 = arith.constant 0 : i32
    %0 = arith.cmpi eq, %arg2, %c0_i32 : i32
    %1 = arith.extui %0 : i1 to i32
    %c0_i32_0 = arith.constant 0 : i32
    %2 = arith.cmpi ne, %1, %c0_i32_0 : i32
    scf.if %2 {
      %cst_10 = arith.constant 0.000000e+00 : f32
      %12 = vector.broadcast %cst_10 : f32 to vector<512x16xf32>
      %c0_11 = arith.constant 0 : index
      %c0_12 = arith.constant 0 : index
      %13 = vector.load %arg7[%c0_11, %c0_12] : memref<512x16xf32, #tpu.memory_space<vmem>>, vector<512x16xf32>
      tpu.vector_store %arg7[%c0_11, %c0_12], %12 {strides = array<i32>} : memref<512x16xf32, #tpu.memory_space<vmem>>, vector<512x16xf32>,
    } else {
    }
    %c0 = arith.constant 0 : index
    %c0_1 = arith.constant 0 : index
    %3 = vector.load %arg7[%c0, %c0_1] : memref<512x16xf32, #tpu.memory_space<vmem>>, vector<512x16xf32>
    %c0_2 = arith.constant 0 : index
    %c0_3 = arith.constant 0 : index
    %4 = vector.load %arg3[%c0_2, %c0_3] : memref<512x147xbf16, #tpu.memory_space<vmem>>, vector<512x147xbf16>
    %c0_4 = arith.constant 0 : index
    %c0_5 = arith.constant 0 : index
    %5 = vector.load %arg4[%c0_4, %c0_5] : memref<147x16xbf16, #tpu.memory_space<vmem>>, vector<147x16xbf16>
    %cst = arith.constant dense<0.000000e+00> : vector<512x16xf32>
    %6 = tpu.matmul %4, %5, %cst {dimension_numbers = #tpu.dot_dimension_numbers<[1], [0], [0], [1], [0, 0, 1, 1], [], []>} : vector<512x147xbf16>, vector<147x16xbf16>, vector<512x16xf32> -> vector<512x16xf32>
    %7 = arith.addf %3, %6 : vector<512x16xf32>
    %c0_6 = arith.constant 0 : index
    %c0_7 = arith.constant 0 : index
    %8 = vector.load %arg7[%c0_6, %c0_7] : memref<512x16xf32, #tpu.memory_space<vmem>>, vector<512x16xf32>
    tpu.vector_store %arg7[%c0_6, %c0_7], %7 {strides = array<i32>} : memref<512x16xf32, #tpu.memory_space<vmem>>, vector<512x16xf32>,
    %c0_i32_8 = arith.constant 0 : i32
    %9 = arith.cmpi eq, %arg2, %c0_i32_8 : i32
    %10 = arith.extui %9 : i1 to i32
    %c0_i32_9 = arith.constant 0 : i32
    %11 = arith.cmpi ne, %10, %c0_i32_9 : i32
    scf.if %11 {
      %c0_10 = arith.constant 0 : index
      %c0_11 = arith.constant 0 : index
      %12 = vector.load %arg7[%c0_10, %c0_11] : memref<512x16xf32, #tpu.memory_space<vmem>>, vector<512x16xf32>
      %c0_12 = arith.constant 0 : index
      %c0_13 = arith.constant 0 : index
      %13 = vector.load %arg5[%c0_12, %c0_13] : memref<1x16xf32, #tpu.memory_space<vmem>>, vector<1x16xf32>
      %14 = vector.broadcast %13 : vector<1x16xf32> to vector<512x16xf32>
      %15 = arith.addf %12, %14 : vector<512x16xf32>
      %cst_14 = arith.constant 0.000000e+00 : f32
      %16 = vector.broadcast %cst_14 : f32 to vector<512x16xf32>
      %17 = arith.maximumf %15, %16 : vector<512x16xf32>
      %c0_15 = arith.constant 0 : index
      %c0_16 = arith.constant 0 : index
      %18 = vector.load %arg6[%c0_15, %c0_16] : memref<512x16xf32, #tpu.memory_space<vmem>>, vector<512x16xf32>
      tpu.vector_store %arg6[%c0_15, %c0_16], %17 {strides = array<i32>} : memref<512x16xf32, #tpu.memory_space<vmem>>, vector<512x16xf32>,
    } else {
    }
    return
  }
  func.func @transform_0(%arg0: i32, %arg1: i32, %arg2: i32) -> (i32, i32) {
    %c0_i32 = arith.constant 0 : i32
    return %arg0, %arg2 : i32, i32
  }
  func.func @transform_1(%arg0: i32, %arg1: i32, %arg2: i32) -> (i32, i32) {
    %c0_i32 = arith.constant 0 : i32
    return %arg2, %arg1 : i32, i32
  }
  func.func @transform_2(%arg0: i32, %arg1: i32, %arg2: i32) -> (i32, i32) {
    %c0_i32 = arith.constant 0 : i32
    %c0_i32_0 = arith.constant 0 : i32
    return %c0_i32, %arg1 : i32, i32
  }
  func.func @transform_3(%arg0: i32, %arg1: i32, %arg2: i32) -> (i32, i32) {
    %c0_i32 = arith.constant 0 : i32
    return %arg0, %arg1 : i32, i32
  }
}

</mosaic_0001>

<bundles_post_ra>
// kernel: tpu_custom_call.1
= control target key start
LH: loop header
LB: loop body
LE: loop exit
PB: predicated region body
PF: predicated region fallthrough
CT: control target
= control target key end

     0   :  { %s2054_s12 = smov 0   ;;  %s2056_s13 = smov 0   ;;  %s2632_s0 = inlined_call_operand.vmem [shape: bf16[2048,147], index: 0, kind: input, shape index: {}]   ;;  %s2633_s1 = inlined_call_operand.vmem [shape: bf16[147,16], index: 1, kind: input, shape index: {}]   ;;  %s2634_s2 = inlined_call_operand.vmem [shape: f32[1,16], index: 2, kind: input, shape index: {}]   ;;  %s2635_s3 = inlined_call_operand.vmem [shape: f32[2048,16], index: 3, kind: output, shape index: {}]  }
   0x1   :  { %s2058_s14 = smov 0  }
   0x2 LB: > { %s32_s15 = sadd.s32 1, %s2025_s13  ;;  %p1737_p0 = scmp.ge.s32.totalorder %s2029_s14, 1  ;;  %s2029_s14 = sphi %s2058_s14, %s13_s14   ;;  %s2025_s13 = sphi %s2056_s13, %s2637_s13   ;;  %s2021_s12 = sphi %s2054_s12, %s2636_s12  }
   0x3   : > { %p34_p1 = scmp.ge.s32.totalorder %s32_s15, 4  ;;  %p191_p2 = scmp.lt.s32.totalorder %s2029_s14, 5 }
   0x5   : > { %s2639_s15 = smov (%p34_p1, %s32_s15), 0  ;;  %p192_p3 = pnand %p1737_p0, %p191_p2 }
   0x6   : > { %s1738_s22 = sshll.u32 (!%p192_p3), %s2021_s12, 6 }
   0x7   : > { %195 = sbr.rel (%p192_p3) target bundleno = 386 (0x182), region = 32  ;;  %p236_p4 = scmp.lt.s32.totalorder (!%p192_p3), %s1738_s22, 255 }
   0xc   : > { %v1900_v0 = vld [vmem:[%s2633_s1 + $0x38] sm:$0xff]   ;;  %v2031_v1 = vmov 0   ;;  %v1901_v2 = vld [vmem:[%s2633_s1 + $0x30] sm:$0xff]   ;;  %v1902_v3 = vld [vmem:[%s2633_s1 + $0x28] sm:$0xff]   ;;  %s2641_s22 = smov (!%p236_p4, %s1738_s22), 255  ;;  %vm829_vm0 = vcmask 154624  }
   0xd   : > { %933 = vmatprep.subr.bf16.mxu0 %v2031_v1  ;;  %1853 = vmatprep.subr.bf16.mxu1 %v2031_v1  ;;  %v1903_v4 = vld [vmem:[%s2633_s1 + $0x20] sm:$0xff]   ;;  %s1852_s25 = sshll.u32 %s2641_s22, 3  ;;  %v1904_v5 = vld [vmem:[%s2633_s1 + $0x18] sm:$0xff]   ;;  %v1905_v8 = vld [vmem:[%s2633_s1 + $0x10] sm:$0xff]   ;;  %vm926_vm1 = vcmask 1040384   ;;  %vm927_vm2 = vcmask 1041408  }
   0xe   : > { %934 = vmatpush1.bf16.msra.mxu0 %v1900_v0  ;;  %1863 = vmatpush1.bf16.msra.mxu1 %v1900_v0  ;;  %s2100_s28 = scalar_lea.vmem %s2632_s0, %s1852_s25  ;;  %v1906_v9 = vld [vmem:[%s2633_s1 + $0x8] sm:$0xff]   ;;  %v2032_v10 = vmov 65535   ;;  %v1907_v12 = vld [vmem:[%s2633_s1] sm:$0xff]   ;;  %vm272_vm3 = vcmask 130048   ;;  %v2033_v17 = vmov 0.0   ;;  %s2378_s21 = scalar_lea.vmem %s2635_s3, %s1852_s25 }
   0xf   : > { %935 = vmatprep.subr.bf16.mxu0 %v2031_v1  ;;  %1854 = vmatprep.subr.bf16.mxu1 %v2031_v1  ;;  %v1912_v6 = vld [vmem:[%s2100_s28 + $0x4] ss:$8 sps:$4 sm:$0xff]   ;;  %v928_v11 = vsel %vm926_vm1, 4294967295, %v2032_v10  ;;  %v1908_v13 = vld [vmem:[%s2633_s1 + $0x48] ss:$0 sps:$4 sm:$0x33]  }
  0x10   : > { %v1915_v7 = vld [vmem:[%s2100_s28 + $0x104] ss:$8 sps:$4 sm:$0xff]   ;;  %1817 = vmatprep.mubr.msk.bf16.mxu0 %vm829_vm0, %v1912_v6  ;;  %v929_v14 = vsel %vm927_vm2, %v928_v11, 0  ;;  %273 = vst.msk [vmem:[#allocation2] sm:$0xff] %vm272_vm3, %v2033_v17  ;;  %274 = vst.msk [vmem:[#allocation2 + $0x8] sm:$0xff] %vm272_vm3, %v2033_v17 }
  0x11   : > { %1833 = vmatprep.mubr.msk.bf16.mxu1 %vm829_vm0, %v1915_v7  ;;  %v931_v15 = vand.u32 %v1908_v13, %v929_v14  ;;  %v2134_v16 = vld [vmem:[%s2633_s1 + $0x40] sm:$0xff]   ;;  %275 = vst.msk [vmem:[#allocation2 + $0x10] sm:$0xff] %vm272_vm3, %v2033_v17  ;;  %276 = vst.msk [vmem:[#allocation2 + $0x18] sm:$0xff] %vm272_vm3, %v2033_v17  ;;  %v1916_v20 = vld [vmem:[%s2100_s28 + $0x14] ss:$8 sps:$4 sm:$0xff]  }
  0x12   : > { %936 = vmatpush1.bf16.msra.mxu0 %v1901_v2  ;;  %1864 = vmatpush1.bf16.msra.mxu1 %v1901_v2  ;;  %277 = vst.msk [vmem:[#allocation2 + $0x20] sm:$0xff] %vm272_vm3, %v2033_v17  ;;  %278 = vst.msk [vmem:[#allocation2 + $0x28] sm:$0xff] %vm272_vm3, %v2033_v17  ;;  %v1910_v18 = vld [vmem:[%s2100_s28] ss:$8 sps:$4 sm:$0xff]   ;;  %v1918_v21 = vld [vmem:[%s2100_s28 + $0x114] ss:$8 sps:$4 sm:$0xff]  }
  0x13   : > { %937 = vmatprep.subr.bf16.mxu0 %v2031_v1  ;;  %1855 = vmatprep.subr.bf16.mxu1 %v2031_v1  ;;  %279 = vst.msk [vmem:[#allocation2 + $0x30] sm:$0xff] %vm272_vm3, %v2033_v17  ;;  %280 = vst.msk [vmem:[#allocation2 + $0x38] sm:$0xff] %vm272_vm3, %v2033_v17  ;;  %v1913_v19 = vld [vmem:[%s2100_s28 + $0x100] ss:$8 sps:$4 sm:$0xff]   ;;  %v1920_v22 = vld [vmem:[%s2100_s28 + $0x10] ss:$8 sps:$4 sm:$0xff]  }
  0x14   : > { %281 = vst.msk [vmem:[#allocation2 + $0x40] sm:$0xff] %vm272_vm3, %v2033_v17  ;;  %282 = vst.msk [vmem:[#allocation2 + $0x48] sm:$0xff] %vm272_vm3, %v2033_v17  ;;  %v1921_v23 = vld [vmem:[%s2100_s28 + $0x110] ss:$8 sps:$4 sm:$0xff]   ;;  %v1922_v24 = vld [vmem:[%s2100_s28 + $0x24] ss:$8 sps:$4 sm:$0xff]  }
  0x15   : > { %283 = vst.msk [vmem:[#allocation2 + $0x50] sm:$0xff] %vm272_vm3, %v2033_v17  ;;  %284 = vst.msk [vmem:[#allocation2 + $0x58] sm:$0xff] %vm272_vm3, %v2033_v17  ;;  %v1924_v25 = vld [vmem:[%s2100_s28 + $0x124] ss:$8 sps:$4 sm:$0xff]   ;;  %v1926_v26 = vld [vmem:[%s2100_s28 + $0x20] ss:$8 sps:$4 sm:$0xff]  }
  0x16   : > { %938 = vmatpush1.bf16.msra.mxu0 %v1902_v3  ;;  %1865 = vmatpush1.bf16.msra.mxu1 %v1902_v3  ;;  %285 = vst.msk [vmem:[#allocation2 + $0x60] sm:$0xff] %vm272_vm3, %v2033_v17  ;;  %286 = vst.msk [vmem:[#allocation2 + $0x68] sm:$0xff] %vm272_vm3, %v2033_v17  ;;  %v1927_v27 = vld [vmem:[%s2100_s28 + $0x120] ss:$8 sps:$4 sm:$0xff]   ;;  %v1928_v28 = vld [vmem:[%s2100_s28 + $0x34] ss:$8 sps:$4 sm:$0xff]  }
  0x17   : > { %939 = vmatprep.subr.bf16.mxu0 %v2031_v1  ;;  %1856 = vmatprep.subr.bf16.mxu1 %v2031_v1  ;;  %287 = vst.msk [vmem:[#allocation2 + $0x70] sm:$0xff] %vm272_vm3, %v2033_v17  ;;  %288 = vst.msk [vmem:[#allocation2 + $0x78] sm:$0xff] %vm272_vm3, %v2033_v17  ;;  %v1930_v29 = vld [vmem:[%s2100_s28 + $0x134] ss:$8 sps:$4 sm:$0xff]   ;;  %v1932_v30 = vld [vmem:[%s2100_s28 + $0x30] ss:$8 sps:$4 sm:$0xff]  }
  0x18   : > { %289 = vst.msk [vmem:[#allocation2 + $0x80] sm:$0xff] %vm272_vm3, %v2033_v17  ;;  %290 = vst.msk [vmem:[#allocation2 + $0x88] sm:$0xff] %vm272_vm3, %v2033_v17  ;;  %v1933_v31 = vld [vmem:[%s2100_s28 + $0x130] ss:$8 sps:$4 sm:$0xff]   ;;  %v1934_v32 = vld [vmem:[%s2100_s28 + $0x44] ss:$8 sps:$4 sm:$0xff]  }
  0x19   : > { %291 = vst.msk [vmem:[#allocation2 + $0x90] sm:$0xff] %vm272_vm3, %v2033_v17  ;;  %292 = vst.msk [vmem:[#allocation2 + $0x98] sm:$0xff] %vm272_vm3, %v2033_v17  ;;  %v1936_v33 = vld [vmem:[%s2100_s28 + $0x144] ss:$8 sps:$4 sm:$0xff]   ;;  %v1938_v34 = vld [vmem:[%s2100_s28 + $0x40] ss:$8 sps:$4 sm:$0xff]  }
  0x1a   : > { %940 = vmatpush1.bf16.msra.mxu0 %v1903_v4  ;;  %1866 = vmatpush1.bf16.msra.mxu1 %v1903_v4  ;;  %293 = vst.msk [vmem:[#allocation2 + $0xa0] sm:$0xff] %vm272_vm3, %v2033_v17  ;;  %294 = vst.msk [vmem:[#allocation2 + $0xa8] sm:$0xff] %vm272_vm3, %v2033_v17  ;;  %v1939_v35 = vld [vmem:[%s2100_s28 + $0x140] ss:$8 sps:$4 sm:$0xff]   ;;  %v1940_v36 = vld [vmem:[%s2100_s28 + $0x54] ss:$8 sps:$4 sm:$0xff]  }
  0x1b   : > { %941 = vmatprep.subr.bf16.mxu0 %v2031_v1  ;;  %1857 = vmatprep.subr.bf16.mxu1 %v2031_v1  ;;  %295 = vst.msk [vmem:[#allocation2 + $0xb0] sm:$0xff] %vm272_vm3, %v2033_v17  ;;  %296 = vst.msk [vmem:[#allocation2 + $0xb8] sm:$0xff] %vm272_vm3, %v2033_v17  ;;  %v1942_v37 = vld [vmem:[%s2100_s28 + $0x154] ss:$8 sps:$4 sm:$0xff]   ;;  %v1944_v38 = vld [vmem:[%s2100_s28 + $0x50] ss:$8 sps:$4 sm:$0xff]  }
  0x1c   : > { %297 = vst.msk [vmem:[#allocation2 + $0xc0] sm:$0xff] %vm272_vm3, %v2033_v17  ;;  %298 = vst.msk [vmem:[#allocation2 + $0xc8] sm:$0xff] %vm272_vm3, %v2033_v17  ;;  %v1945_v39 = vld [vmem:[%s2100_s28 + $0x150] ss:$8 sps:$4 sm:$0xff]   ;;  %v1946_v40 = vld [vmem:[%s2100_s28 + $0x64] ss:$8 sps:$4 sm:$0xff]  }
  0x1d   : > { %299 = vst.msk [vmem:[#allocation2 + $0xd0] sm:$0xff] %vm272_vm3, %v2033_v17  ;;  %300 = vst.msk [vmem:[#allocation2 + $0xd8] sm:$0xff] %vm272_vm3, %v2033_v17  ;;  %v1948_v41 = vld [vmem:[%s2100_s28 + $0x164] ss:$8 sps:$4 sm:$0xff]   ;;  %v1950_v42 = vld [vmem:[%s2100_s28 + $0x60] ss:$8 sps:$4 sm:$0xff]  }
  0x1e   : > { %942 = vmatpush1.bf16.msra.mxu0 %v1904_v5  ;;  %1867 = vmatpush1.bf16.msra.mxu1 %v1904_v5  ;;  %301 = vst.msk [vmem:[#allocation2 + $0xe0] sm:$0xff] %vm272_vm3, %v2033_v17  ;;  %302 = vst.msk [vmem:[#allocation2 + $0xe8] sm:$0xff] %vm272_vm3, %v2033_v17  ;;  %v1951_v43 = vld [vmem:[%s2100_s28 + $0x160] ss:$8 sps:$4 sm:$0xff]   ;;  %v1952_v44 = vld [vmem:[%s2100_s28 + $0x74] ss:$8 sps:$4 sm:$0xff]  }
  0x1f   : > { %943 = vmatprep.subr.bf16.mxu0 %v2031_v1  ;;  %1858 = vmatprep.subr.bf16.mxu1 %v2031_v1  ;;  %303 = vst.msk [vmem:[#allocation2 + $0xf0] sm:$0xff] %vm272_vm3, %v2033_v17  ;;  %304 = vst.msk [vmem:[#allocation2 + $0xf8] sm:$0xff] %vm272_vm3, %v2033_v17  ;;  %v1954_v45 = vld [vmem:[%s2100_s28 + $0x174] ss:$8 sps:$4 sm:$0xff]   ;;  %v1956_v46 = vld [vmem:[%s2100_s28 + $0x70] ss:$8 sps:$4 sm:$0xff]  }
  0x20   : > { %305 = vst.msk [vmem:[#allocation2 + $0x100] sm:$0xff] %vm272_vm3, %v2033_v17  ;;  %306 = vst.msk [vmem:[#allocation2 + $0x108] sm:$0xff] %vm272_vm3, %v2033_v17  ;;  %v1957_v47 = vld [vmem:[%s2100_s28 + $0x170] ss:$8 sps:$4 sm:$0xff]   ;;  %v1958_v48 = vld [vmem:[%s2100_s28 + $0x84] ss:$8 sps:$4 sm:$0xff]  }
  0x21   : > { %307 = vst.msk [vmem:[#allocation2 + $0x110] sm:$0xff] %vm272_vm3, %v2033_v17  ;;  %308 = vst.msk [vmem:[#allocation2 + $0x118] sm:$0xff] %vm272_vm3, %v2033_v17  ;;  %v1960_v49 = vld [vmem:[%s2100_s28 + $0x184] ss:$8 sps:$4 sm:$0xff]   ;;  %v1962_v50 = vld [vmem:[%s2100_s28 + $0x80] ss:$8 sps:$4 sm:$0xff]  }
  0x22   : > { %944 = vmatpush1.bf16.msra.mxu0 %v1905_v8  ;;  %1868 = vmatpush1.bf16.msra.mxu1 %v1905_v8  ;;  %309 = vst.msk [vmem:[#allocation2 + $0x120] sm:$0xff] %vm272_vm3, %v2033_v17  ;;  %310 = vst.msk [vmem:[#allocation2 + $0x128] sm:$0xff] %vm272_vm3, %v2033_v17  ;;  %v1963_v51 = vld [vmem:[%s2100_s28 + $0x180] ss:$8 sps:$4 sm:$0xff]   ;;  %v1964_v52 = vld [vmem:[%s2100_s28 + $0x94] ss:$8 sps:$4 sm:$0xff]  }
  0x23   : > { %945 = vmatprep.subr.bf16.mxu0 %v2031_v1  ;;  %1859 = vmatprep.subr.bf16.mxu1 %v2031_v1  ;;  %311 = vst.msk [vmem:[#allocation2 + $0x130] sm:$0xff] %vm272_vm3, %v2033_v17  ;;  %312 = vst.msk [vmem:[#allocation2 + $0x138] sm:$0xff] %vm272_vm3, %v2033_v17  ;;  %v1966_v53 = vld [vmem:[%s2100_s28 + $0x194] ss:$8 sps:$4 sm:$0xff]   ;;  %v1968_v54 = vld [vmem:[%s2100_s28 + $0x90] ss:$8 sps:$4 sm:$0xff]  }
  0x24   : > { %313 = vst.msk [vmem:[#allocation2 + $0x140] sm:$0xff] %vm272_vm3, %v2033_v17  ;;  %314 = vst.msk [vmem:[#allocation2 + $0x148] sm:$0xff] %vm272_vm3, %v2033_v17  ;;  %v1969_v55 = vld [vmem:[%s2100_s28 + $0x190] ss:$8 sps:$4 sm:$0xff]   ;;  %v1970_v56 = vld [vmem:[%s2100_s28 + $0xa4] ss:$8 sps:$4 sm:$0xff]  }
  0x25   : > { %315 = vst.msk [vmem:[#allocation2 + $0x150] sm:$0xff] %vm272_vm3, %v2033_v17  ;;  %316 = vst.msk [vmem:[#allocation2 + $0x158] sm:$0xff] %vm272_vm3, %v2033_v17  ;;  %v1972_v57 = vld [vmem:[%s2100_s28 + $0x1a4] ss:$8 sps:$4 sm:$0xff]   ;;  %v1974_v58 = vld [vmem:[%s2100_s28 + $0xa0] ss:$8 sps:$4 sm:$0xff]  }
  0x26   : > { %946 = vmatpush1.bf16.msra.mxu0 %v1906_v9  ;;  %1869 = vmatpush1.bf16.msra.mxu1 %v1906_v9  ;;  %317 = vst.msk [vmem:[#allocation2 + $0x160] sm:$0xff] %vm272_vm3, %v2033_v17  ;;  %318 = vst.msk [vmem:[#allocation2 + $0x168] sm:$0xff] %vm272_vm3, %v2033_v17  ;;  %v1975_v59 = vld [vmem:[%s2100_s28 + $0x1a0] ss:$8 sps:$4 sm:$0xff]   ;;  %v1976_v60 = vld [vmem:[%s2100_s28 + $0xb4] ss:$8 sps:$4 sm:$0xff]  }
  0x27   : > { %947 = vmatprep.subr.bf16.mxu0 %v2031_v1  ;;  %1860 = vmatprep.subr.bf16.mxu1 %v2031_v1  ;;  %319 = vst.msk [vmem:[#allocation2 + $0x170] sm:$0xff] %vm272_vm3, %v2033_v17  ;;  %320 = vst.msk [vmem:[#allocation2 + $0x178] sm:$0xff] %vm272_vm3, %v2033_v17  ;;  %v1978_v61 = vld [vmem:[%s2100_s28 + $0x1b4] ss:$8 sps:$4 sm:$0xff]   ;;  %v1980_v62 = vld [vmem:[%s2100_s28 + $0xb0] ss:$8 sps:$4 sm:$0xff]  }
  0x28   : > { %321 = vst.msk [vmem:[#allocation2 + $0x180] sm:$0xff] %vm272_vm3, %v2033_v17  ;;  %322 = vst.msk [vmem:[#allocation2 + $0x188] sm:$0xff] %vm272_vm3, %v2033_v17  ;;  %v1981_v63 = vld [vmem:[%s2100_s28 + $0x1b0] ss:$8 sps:$4 sm:$0xff]   ;;  %v1982_v0 = vld [vmem:[%s2100_s28 + $0xc4] ss:$8 sps:$4 sm:$0xff]  }
  0x29   : > { %323 = vst.msk [vmem:[#allocation2 + $0x190] sm:$0xff] %vm272_vm3, %v2033_v17  ;;  %324 = vst.msk [vmem:[#allocation2 + $0x198] sm:$0xff] %vm272_vm3, %v2033_v17  ;;  %v1986_v2 = vld [vmem:[%s2100_s28 + $0xc0] ss:$8 sps:$4 sm:$0xff]   ;;  %v1988_v4 = vld [vmem:[%s2100_s28 + $0xd4] ss:$8 sps:$4 sm:$0xff]  }
  0x2a   : > { %948 = vmatpush1.bf16.msra.mxu0 %v1907_v12  ;;  %1870 = vmatpush1.bf16.msra.mxu1 %v1907_v12  ;;  %325 = vst.msk [vmem:[#allocation2 + $0x1a0] sm:$0xff] %vm272_vm3, %v2033_v17  ;;  %326 = vst.msk [vmem:[#allocation2 + $0x1a8] sm:$0xff] %vm272_vm3, %v2033_v17  ;;  %v1987_v3 = vld [vmem:[%s2100_s28 + $0x1c0] ss:$8 sps:$4 sm:$0xff]   ;;  %v1990_v5 = vld [vmem:[%s2100_s28 + $0x1d4] ss:$8 sps:$4 sm:$0xff]  }
  0x2b   : > { %961 = vmatprep.subr.bf16.mxu0 %v2031_v1  ;;  %1861 = vmatprep.subr.bf16.mxu1 %v2031_v1  ;;  %327 = vst.msk [vmem:[#allocation2 + $0x1b0] sm:$0xff] %vm272_vm3, %v2033_v17  ;;  %328 = vst.msk [vmem:[#allocation2 + $0x1b8] sm:$0xff] %vm272_vm3, %v2033_v17  ;;  %v1992_v6 = vld [vmem:[%s2100_s28 + $0xd0] ss:$8 sps:$4 sm:$0xff]   ;;  %v1994_v8 = vld [vmem:[%s2100_s28 + $0xe4] ss:$8 sps:$4 sm:$0xff]  }
  0x2c   : > { %329 = vst.msk [vmem:[#allocation2 + $0x1c0] sm:$0xff] %vm272_vm3, %v2033_v17  ;;  %330 = vst.msk [vmem:[#allocation2 + $0x1c8] sm:$0xff] %vm272_vm3, %v2033_v17  ;;  %v1993_v7 = vld [vmem:[%s2100_s28 + $0x1d0] ss:$8 sps:$4 sm:$0xff]   ;;  %v1996_v9 = vld [vmem:[%s2100_s28 + $0x1e4] ss:$8 sps:$4 sm:$0xff]  }
  0x2d   : > { %331 = vst.msk [vmem:[#allocation2 + $0x1d0] sm:$0xff] %vm272_vm3, %v2033_v17  ;;  %332 = vst.msk [vmem:[#allocation2 + $0x1d8] sm:$0xff] %vm272_vm3, %v2033_v17  ;;  %v1998_v10 = vld [vmem:[%s2100_s28 + $0xe0] ss:$8 sps:$4 sm:$0xff]   ;;  %v2000_v12 = vld [vmem:[%s2100_s28 + $0xf4] ss:$8 sps:$4 sm:$0xff]  }
  0x2e   : > { %962 = vmatpush2.bf16.msra.mxu0 %v931_v15  ;;  %1871 = vmatpush2.bf16.msra.mxu1 %v931_v15  ;;  %333 = vst.msk [vmem:[#allocation2 + $0x1e0] sm:$0xff] %vm272_vm3, %v2033_v17  ;;  %334 = vst.msk [vmem:[#allocation2 + $0x1e8] sm:$0xff] %vm272_vm3, %v2033_v17  ;;  %v1999_v11 = vld [vmem:[%s2100_s28 + $0x1e0] ss:$8 sps:$4 sm:$0xff]   ;;  %v2002_v13 = vld [vmem:[%s2100_s28 + $0x1f4] ss:$8 sps:$4 sm:$0xff]  }
  0x2f   : > { %963 = vmatprep.subr.bf16.mxu0 %v2031_v1  ;;  %1862 = vmatprep.subr.bf16.mxu1 %v2031_v1  ;;  %335 = vst.msk [vmem:[#allocation2 + $0x1f0] sm:$0xff] %vm272_vm3, %v2033_v17  ;;  %336 = vst.msk [vmem:[#allocation2 + $0x1f8] sm:$0xff] %vm272_vm3, %v2033_v17  ;;  %v1984_v1 = vld [vmem:[%s2100_s28 + $0x1c4] ss:$8 sps:$4 sm:$0xff]   ;;  %v2004_v14 = vld [vmem:[%s2100_s28 + $0xf0] ss:$8 sps:$4 sm:$0xff]  }
  0x30   : > { %v2005_v15 = vld [vmem:[%s2100_s28 + $0x1f0] ss:$8 sps:$4 sm:$0xff]   ;;  %v369_v17 = vld [vmem:[#allocation2 + $0x100] sm:$0xff] }
  0x32   : > { %964 = vmatpush2.bf16.msra.mxu0 %v2134_v16  ;;  %1872 = vmatpush2.bf16.msra.mxu1 %v2134_v16  ;;  %v337_v16 = vld [vmem:[#allocation2] sm:$0xff] }
  0x35   : > { %966 = vmatmul.mubr.bf16.vlgmr.msra.gmra.mxu0 %v1910_v18  ;;  %1094 = vmatmul.mubr.bf16.vlgmr.msra.gmra.mxu1 %v1913_v19 }
  0x36   : > { %1818 = vmatprep.mubr.msk.bf16.mxu0 %vm829_vm0, %v1916_v20  ;;  %1834 = vmatprep.mubr.msk.bf16.mxu1 %vm829_vm0, %v1918_v21 }
  0x3d   : > { %974 = vmatmul.mubr.bf16.gmra.mxu0 %v1920_v22  ;;  %1102 = vmatmul.mubr.bf16.gmra.mxu1 %v1921_v23 }
  0x3e   : > { %1819 = vmatprep.mubr.msk.bf16.mxu0 %vm829_vm0, %v1922_v24  ;;  %1835 = vmatprep.mubr.msk.bf16.mxu1 %vm829_vm0, %v1924_v25  ;;  %v338_v24 = vld [vmem:[#allocation2 + $0x8] sm:$0xff] }
  0x3f   : > { %v370_v25 = vld [vmem:[#allocation2 + $0x108] sm:$0xff] }
  0x45   : > { %982 = vmatmul.mubr.bf16.gmra.mxu0 %v1926_v26  ;;  %1110 = vmatmul.mubr.bf16.gmra.mxu1 %v1927_v27 }
  0x46   : > { %1820 = vmatprep.mubr.msk.bf16.mxu0 %vm829_vm0, %v1928_v28  ;;  %1836 = vmatprep.mubr.msk.bf16.mxu1 %vm829_vm0, %v1930_v29 }
  0x4d   : > { %990 = vmatmul.mubr.bf16.gmra.mxu0 %v1932_v30  ;;  %1118 = vmatmul.mubr.bf16.gmra.mxu1 %v1933_v31 }
  0x4e   : > { %1821 = vmatprep.mubr.msk.bf16.mxu0 %vm829_vm0, %v1934_v32  ;;  %1837 = vmatprep.mubr.msk.bf16.mxu1 %vm829_vm0, %v1936_v33  ;;  %v339_v32 = vld [vmem:[#allocation2 + $0x10] sm:$0xff] }
  0x4f   : > { %v371_v33 = vld [vmem:[#allocation2 + $0x110] sm:$0xff] }
  0x55   : > { %998 = vmatmul.mubr.bf16.gmra.mxu0 %v1938_v34  ;;  %1126 = vmatmul.mubr.bf16.gmra.mxu1 %v1939_v35  ;;  %v2367_v34 = vld [vmem:[%s2634_s2] ss:$0 sm:$0xff] }
  0x56   : > { %1822 = vmatprep.mubr.msk.bf16.mxu0 %vm829_vm0, %v1940_v36  ;;  %1838 = vmatprep.mubr.msk.bf16.mxu1 %vm829_vm0, %v1942_v37 }
  0x5d   : > { %1006 = vmatmul.mubr.bf16.gmra.mxu0 %v1944_v38  ;;  %1134 = vmatmul.mubr.bf16.gmra.mxu1 %v1945_v39  ;;  %v340_v39 = vld [vmem:[#allocation2 + $0x18] sm:$0xff] }
  0x5e   : > { %1823 = vmatprep.mubr.msk.bf16.mxu0 %vm829_vm0, %v1946_v40  ;;  %1839 = vmatprep.mubr.msk.bf16.mxu1 %vm829_vm0, %v1948_v41 }
  0x65   : > { %1014 = vmatmul.mubr.bf16.gmra.mxu0 %v1950_v42  ;;  %1142 = vmatmul.mubr.bf16.gmra.mxu1 %v1951_v43 }
  0x66   : > { %1824 = vmatprep.mubr.msk.bf16.mxu0 %vm829_vm0, %v1952_v44  ;;  %1840 = vmatprep.mubr.msk.bf16.mxu1 %vm829_vm0, %v1954_v45  ;;  %v372_v44 = vld [vmem:[#allocation2 + $0x118] sm:$0xff] }
  0x6d   : > { %1022 = vmatmul.mubr.bf16.gmra.mxu0 %v1956_v46  ;;  %1150 = vmatmul.mubr.bf16.gmra.mxu1 %v1957_v47 }
  0x6e   : > { %1825 = vmatprep.mubr.msk.bf16.mxu0 %vm829_vm0, %v1958_v48  ;;  %1841 = vmatprep.mubr.msk.bf16.mxu1 %vm829_vm0, %v1960_v49 }
  0x75   : > { %1030 = vmatmul.mubr.bf16.gmra.mxu0 %v1962_v50  ;;  %1158 = vmatmul.mubr.bf16.gmra.mxu1 %v1963_v51 }
  0x76   : > { %1826 = vmatprep.mubr.msk.bf16.mxu0 %vm829_vm0, %v1964_v52  ;;  %1842 = vmatprep.mubr.msk.bf16.mxu1 %vm829_vm0, %v1966_v53  ;;  %v341_v53 = vld [vmem:[#allocation2 + $0x20] sm:$0xff] }
  0x7d   : > { %1038 = vmatmul.mubr.bf16.gmra.mxu0 %v1968_v54  ;;  %1166 = vmatmul.mubr.bf16.gmra.mxu1 %v1969_v55 }
  0x7e   : > { %1827 = vmatprep.mubr.msk.bf16.mxu0 %vm829_vm0, %v1970_v56  ;;  %1843 = vmatprep.mubr.msk.bf16.mxu1 %vm829_vm0, %v1972_v57 }
  0x85   : > { %1046 = vmatmul.mubr.bf16.gmra.mxu0 %v1974_v58  ;;  %1174 = vmatmul.mubr.bf16.gmra.mxu1 %v1975_v59  ;;  %v373_v58 = vld [vmem:[#allocation2 + $0x120] sm:$0xff] }
  0x86   : > { %1828 = vmatprep.mubr.msk.bf16.mxu0 %vm829_vm0, %v1976_v60  ;;  %1844 = vmatprep.mubr.msk.bf16.mxu1 %vm829_vm0, %v1978_v61 }
  0x8d   : > { %1054 = vmatmul.mubr.bf16.gmra.mxu0 %v1980_v62  ;;  %1182 = vmatmul.mubr.bf16.gmra.mxu1 %v1981_v63 }
  0x8e   : > { %1829 = vmatprep.mubr.msk.bf16.mxu0 %vm829_vm0, %v1982_v0  ;;  %1845 = vmatprep.mubr.msk.bf16.mxu1 %vm829_vm0, %v1984_v1 }
  0x95   : > { %1062 = vmatmul.mubr.bf16.gmra.mxu0 %v1986_v2  ;;  %1190 = vmatmul.mubr.bf16.gmra.mxu1 %v1987_v3  ;;  %v342_v3 = vld [vmem:[#allocation2 + $0x28] sm:$0xff] }
  0x96   : > { %1830 = vmatprep.mubr.msk.bf16.mxu0 %vm829_vm0, %v1988_v4  ;;  %1846 = vmatprep.mubr.msk.bf16.mxu1 %vm829_vm0, %v1990_v5 }
  0x9d   : > { %1070 = vmatmul.mubr.bf16.gmra.mxu0 %v1992_v6  ;;  %1198 = vmatmul.mubr.bf16.gmra.mxu1 %v1993_v7 }
  0x9e   : > { %1831 = vmatprep.mubr.msk.bf16.mxu0 %vm829_vm0, %v1994_v8  ;;  %1847 = vmatprep.mubr.msk.bf16.mxu1 %vm829_vm0, %v1996_v9  ;;  %v374_v8 = vld [vmem:[#allocation2 + $0x128] sm:$0xff] }
  0xa5   : > { %1078 = vmatmul.mubr.bf16.gmra.mxu0 %v1998_v10  ;;  %1206 = vmatmul.mubr.bf16.gmra.mxu1 %v1999_v11 }
  0xa6   : > { %1832 = vmatprep.mubr.msk.bf16.mxu0 %vm829_vm0, %v2000_v12  ;;  %1848 = vmatprep.mubr.msk.bf16.mxu1 %vm829_vm0, %v2002_v13 }
  0xad   : > { %1086 = vmatmul.mubr.bf16.gmra.mxu0 %v2004_v14  ;;  %1214 = vmatmul.mubr.bf16.gmra.mxu1 %v2005_v15 }
  0xf5   : > { %v967_v18 = vpop.f32.mrf.mxu0  ;;  %v1095_v19 = vpop.f32.mrf.mxu1 }
  0xf6   : > { %v1222_v20 = vadd.f32 %v967_v18, %v337_v16  ;;  %v1254_v21 = vadd.f32 %v1095_v19, %v369_v17  ;;  %v343_v17 = vld [vmem:[#allocation2 + $0x30] sm:$0xff] }
  0xf7   : > { %v969_v22 = vpop.f32.mrf.mxu0  ;;  %v1097_v23 = vpop.f32.mrf.mxu1 }
  0xf8   : > { %1287 = vst.msk [vmem:[#allocation2] sm:$0xff] %vm272_vm3, %v1222_v20  ;;  %1319 = vst.msk [vmem:[#allocation2 + $0x100] sm:$0xff] %vm272_vm3, %v1254_v21  ;;  %v375_v22 = vld [vmem:[#allocation2 + $0x130] sm:$0xff] }
  0xf9   : > { %v970_v26 = vpop.f32.mrf.mxu0  ;;  %v1098_v27 = vpop.f32.mrf.mxu1 }
  0xfa   : > { %v1223_v28 = vadd.f32 %v970_v26, %v338_v24  ;;  %v1255_v29 = vadd.f32 %v1098_v27, %v370_v25 }
  0xfb   : > { %v972_v30 = vpop.f32.mrf.mxu0  ;;  %v1100_v31 = vpop.f32.mrf.mxu1 }
  0xfc   : > { %1288 = vst.msk [vmem:[#allocation2 + $0x8] sm:$0xff] %vm272_vm3, %v1223_v28  ;;  %1320 = vst.msk [vmem:[#allocation2 + $0x108] sm:$0xff] %vm272_vm3, %v1255_v29  ;;  %v344_v31 = vld [vmem:[#allocation2 + $0x38] sm:$0xff] }
  0xfd   : > { %v975_v35 = vpop.f32.mrf.mxu0  ;;  %v1103_v36 = vpop.f32.mrf.mxu1 }
  0xfe   : > { %v1224_v37 = vadd.f32 %v975_v35, %v339_v32  ;;  %v1256_v38 = vadd.f32 %v1103_v36, %v371_v33 }
  0xff   : > { %v1354_v40 = vld [vmem:[#allocation2] sm:$0xff]  ;;  %v977_v42 = vpop.f32.mrf.mxu0  ;;  %v1105_v43 = vpop.f32.mrf.mxu1 }
 0x100   : > { %v1386_v41 = vld [vmem:[#allocation2 + $0x100] sm:$0xff]  ;;  %v1425_v45 = vadd.f32 %v2367_v34, %v1354_v40  ;;  %1289 = vst.msk [vmem:[#allocation2 + $0x10] sm:$0xff] %vm272_vm3, %v1224_v37  ;;  %1321 = vst.msk [vmem:[#allocation2 + $0x110] sm:$0xff] %vm272_vm3, %v1256_v38  ;;  %v376_v37 = vld [vmem:[#allocation2 + $0x138] sm:$0xff] }
 0x101   : > { %v1457_v46 = vadd.f32 %v2367_v34, %v1386_v41  ;;  %v978_v47 = vpop.f32.mrf.mxu0  ;;  %v1106_v48 = vpop.f32.mrf.mxu1 }
 0x102   : > { %v1489_v49 = vmax.f32 %v1425_v45, 0.0  ;;  %v1225_v51 = vadd.f32 %v978_v47, %v340_v39  ;;  %v1257_v52 = vadd.f32 %v1106_v48, %v372_v44 }
 0x103   : > { %v1521_v50 = vmax.f32 %v1457_v46, 0.0  ;;  %v1355_v54 = vld [vmem:[#allocation2 + $0x8] sm:$0xff]  ;;  %v980_v56 = vpop.f32.mrf.mxu0  ;;  %v1108_v57 = vpop.f32.mrf.mxu1  ;;  %v345_v46 = vld [vmem:[#allocation2 + $0x40] sm:$0xff] }
 0x104   : > { %v1387_v55 = vld [vmem:[#allocation2 + $0x108] sm:$0xff]  ;;  %1553 = vst.msk [vmem:[%s2378_s21] sm:$0xff] %vm272_vm3, %v1489_v49  ;;  %v1426_v59 = vadd.f32 %v2367_v34, %v1355_v54  ;;  %1290 = vst.msk [vmem:[#allocation2 + $0x18] sm:$0xff] %vm272_vm3, %v1225_v51  ;;  %v377_v51 = vld [vmem:[#allocation2 + $0x140] sm:$0xff] }
 0x105   : > { %1585 = vst.msk [vmem:[%s2378_s21 + $0x100] sm:$0xff] %vm272_vm3, %v1521_v50  ;;  %v1458_v60 = vadd.f32 %v2367_v34, %v1387_v55  ;;  %1322 = vst.msk [vmem:[#allocation2 + $0x118] sm:$0xff] %vm272_vm3, %v1257_v52  ;;  %v983_v61 = vpop.f32.mrf.mxu0  ;;  %v1111_v62 = vpop.f32.mrf.mxu1 }
 0x106   : > { %v1490_v63 = vmax.f32 %v1426_v59, 0.0  ;;  %v1226_v1 = vadd.f32 %v983_v61, %v341_v53  ;;  %v1258_v2 = vadd.f32 %v1111_v62, %v373_v58 }
 0x107   : > { %v1522_v0 = vmax.f32 %v1458_v60, 0.0  ;;  %v1356_v4 = vld [vmem:[#allocation2 + $0x10] sm:$0xff]  ;;  %v985_v6 = vpop.f32.mrf.mxu0  ;;  %v1113_v7 = vpop.f32.mrf.mxu1  ;;  %v346_v60 = vld [vmem:[#allocation2 + $0x48] sm:$0xff] }
 0x108   : > { %v1388_v5 = vld [vmem:[#allocation2 + $0x110] sm:$0xff]  ;;  %1554 = vst.msk [vmem:[%s2378_s21 + $0x8] sm:$0xff] %vm272_vm3, %v1490_v63  ;;  %v1427_v9 = vadd.f32 %v2367_v34, %v1356_v4  ;;  %1291 = vst.msk [vmem:[#allocation2 + $0x20] sm:$0xff] %vm272_vm3, %v1226_v1  ;;  %v378_v1 = vld [vmem:[#allocation2 + $0x148] sm:$0xff] }
 0x109   : > { %1586 = vst.msk [vmem:[%s2378_s21 + $0x108] sm:$0xff] %vm272_vm3, %v1522_v0  ;;  %v1459_v10 = vadd.f32 %v2367_v34, %v1388_v5  ;;  %1323 = vst.msk [vmem:[#allocation2 + $0x120] sm:$0xff] %vm272_vm3, %v1258_v2  ;;  %v986_v11 = vpop.f32.mrf.mxu0  ;;  %v1114_v12 = vpop.f32.mrf.mxu1 }
 0x10a   : > { %v1491_v13 = vmax.f32 %v1427_v9, 0.0  ;;  %v1227_v15 = vadd.f32 %v986_v11, %v342_v3  ;;  %v1259_v16 = vadd.f32 %v1114_v12, %v374_v8 }
 0x10b   : > { %v1523_v14 = vmax.f32 %v1459_v10, 0.0  ;;  %v1357_v18 = vld [vmem:[#allocation2 + $0x18] sm:$0xff]  ;;  %v988_v20 = vpop.f32.mrf.mxu0  ;;  %v1116_v21 = vpop.f32.mrf.mxu1  ;;  %v347_v10 = vld [vmem:[#allocation2 + $0x50] sm:$0xff] }
 0x10c   : > { %v1389_v19 = vld [vmem:[#allocation2 + $0x118] sm:$0xff]  ;;  %1555 = vst.msk [vmem:[%s2378_s21 + $0x10] sm:$0xff] %vm272_vm3, %v1491_v13  ;;  %v1428_v23 = vadd.f32 %v2367_v34, %v1357_v18  ;;  %1292 = vst.msk [vmem:[#allocation2 + $0x28] sm:$0xff] %vm272_vm3, %v1227_v15  ;;  %v379_v15 = vld [vmem:[#allocation2 + $0x150] sm:$0xff] }
 0x10d   : > { %1587 = vst.msk [vmem:[%s2378_s21 + $0x110] sm:$0xff] %vm272_vm3, %v1523_v14  ;;  %v1460_v24 = vadd.f32 %v2367_v34, %v1389_v19  ;;  %1324 = vst.msk [vmem:[#allocation2 + $0x128] sm:$0xff] %vm272_vm3, %v1259_v16  ;;  %v991_v25 = vpop.f32.mrf.mxu0  ;;  %v1119_v26 = vpop.f32.mrf.mxu1 }
 0x10e   : > { %v1492_v27 = vmax.f32 %v1428_v23, 0.0  ;;  %v1228_v29 = vadd.f32 %v991_v25, %v343_v17  ;;  %v1260_v30 = vadd.f32 %v1119_v26, %v375_v22 }
 0x10f   : > { %v1524_v28 = vmax.f32 %v1460_v24, 0.0  ;;  %v1358_v32 = vld [vmem:[#allocation2 + $0x20] sm:$0xff]  ;;  %v993_v35 = vpop.f32.mrf.mxu0  ;;  %v1121_v36 = vpop.f32.mrf.mxu1  ;;  %v348_v24 = vld [vmem:[#allocation2 + $0x58] sm:$0xff] }
 0x110   : > { %v1390_v33 = vld [vmem:[#allocation2 + $0x120] sm:$0xff]  ;;  %1556 = vst.msk [vmem:[%s2378_s21 + $0x18] sm:$0xff] %vm272_vm3, %v1492_v27  ;;  %v1429_v38 = vadd.f32 %v2367_v34, %v1358_v32  ;;  %1293 = vst.msk [vmem:[#allocation2 + $0x30] sm:$0xff] %vm272_vm3, %v1228_v29  ;;  %v380_v29 = vld [vmem:[#allocation2 + $0x158] sm:$0xff] }
 0x111   : > { %1588 = vst.msk [vmem:[%s2378_s21 + $0x118] sm:$0xff] %vm272_vm3, %v1524_v28  ;;  %v1461_v39 = vadd.f32 %v2367_v34, %v1390_v33  ;;  %1325 = vst.msk [vmem:[#allocation2 + $0x130] sm:$0xff] %vm272_vm3, %v1260_v30  ;;  %v994_v40 = vpop.f32.mrf.mxu0  ;;  %v1122_v41 = vpop.f32.mrf.mxu1 }
 0x112   : > { %v1493_v42 = vmax.f32 %v1429_v38, 0.0  ;;  %v1229_v44 = vadd.f32 %v994_v40, %v344_v31  ;;  %v1261_v45 = vadd.f32 %v1122_v41, %v376_v37 }
 0x113   : > { %v1525_v43 = vmax.f32 %v1461_v39, 0.0  ;;  %v1359_v47 = vld [vmem:[#allocation2 + $0x28] sm:$0xff]  ;;  %v996_v49 = vpop.f32.mrf.mxu0  ;;  %v1124_v50 = vpop.f32.mrf.mxu1  ;;  %v349_v39 = vld [vmem:[#allocation2 + $0x60] sm:$0xff] }
 0x114   : > { %v1391_v48 = vld [vmem:[#allocation2 + $0x128] sm:$0xff]  ;;  %1557 = vst.msk [vmem:[%s2378_s21 + $0x20] sm:$0xff] %vm272_vm3, %v1493_v42  ;;  %v1430_v52 = vadd.f32 %v2367_v34, %v1359_v47  ;;  %1294 = vst.msk [vmem:[#allocation2 + $0x38] sm:$0xff] %vm272_vm3, %v1229_v44  ;;  %v381_v44 = vld [vmem:[#allocation2 + $0x160] sm:$0xff] }
 0x115   : > { %1589 = vst.msk [vmem:[%s2378_s21 + $0x120] sm:$0xff] %vm272_vm3, %v1525_v43  ;;  %v1462_v53 = vadd.f32 %v2367_v34, %v1391_v48  ;;  %1326 = vst.msk [vmem:[#allocation2 + $0x138] sm:$0xff] %vm272_vm3, %v1261_v45  ;;  %v999_v54 = vpop.f32.mrf.mxu0  ;;  %v1127_v55 = vpop.f32.mrf.mxu1 }
 0x116   : > { %v1494_v56 = vmax.f32 %v1430_v52, 0.0  ;;  %v1230_v58 = vadd.f32 %v999_v54, %v345_v46  ;;  %v1262_v59 = vadd.f32 %v1127_v55, %v377_v51 }
 0x117   : > { %v1526_v57 = vmax.f32 %v1462_v53, 0.0  ;;  %v1360_v61 = vld [vmem:[#allocation2 + $0x30] sm:$0xff]  ;;  %v1001_v63 = vpop.f32.mrf.mxu0  ;;  %v1129_v0 = vpop.f32.mrf.mxu1  ;;  %v350_v53 = vld [vmem:[#allocation2 + $0x68] sm:$0xff] }
 0x118   : > { %v1392_v62 = vld [vmem:[#allocation2 + $0x130] sm:$0xff]  ;;  %1558 = vst.msk [vmem:[%s2378_s21 + $0x28] sm:$0xff] %vm272_vm3, %v1494_v56  ;;  %v1431_v2 = vadd.f32 %v2367_v34, %v1360_v61  ;;  %1295 = vst.msk [vmem:[#allocation2 + $0x40] sm:$0xff] %vm272_vm3, %v1230_v58  ;;  %v382_v58 = vld [vmem:[#allocation2 + $0x168] sm:$0xff] }
 0x119   : > { %1590 = vst.msk [vmem:[%s2378_s21 + $0x128] sm:$0xff] %vm272_vm3, %v1526_v57  ;;  %v1463_v3 = vadd.f32 %v2367_v34, %v1392_v62  ;;  %1327 = vst.msk [vmem:[#allocation2 + $0x140] sm:$0xff] %vm272_vm3, %v1262_v59  ;;  %v1002_v4 = vpop.f32.mrf.mxu0  ;;  %v1130_v5 = vpop.f32.mrf.mxu1 }
 0x11a   : > { %v1495_v6 = vmax.f32 %v1431_v2, 0.0  ;;  %v1231_v8 = vadd.f32 %v1002_v4, %v346_v60  ;;  %v1263_v9 = vadd.f32 %v1130_v5, %v378_v1 }
 0x11b   : > { %v1527_v7 = vmax.f32 %v1463_v3, 0.0  ;;  %v1361_v11 = vld [vmem:[#allocation2 + $0x38] sm:$0xff]  ;;  %v1004_v13 = vpop.f32.mrf.mxu0  ;;  %v1132_v14 = vpop.f32.mrf.mxu1  ;;  %v351_v3 = vld [vmem:[#allocation2 + $0x70] sm:$0xff] }
 0x11c   : > { %v1393_v12 = vld [vmem:[#allocation2 + $0x138] sm:$0xff]  ;;  %1559 = vst.msk [vmem:[%s2378_s21 + $0x30] sm:$0xff] %vm272_vm3, %v1495_v6  ;;  %v1432_v16 = vadd.f32 %v2367_v34, %v1361_v11  ;;  %1296 = vst.msk [vmem:[#allocation2 + $0x48] sm:$0xff] %vm272_vm3, %v1231_v8  ;;  %v383_v8 = vld [vmem:[#allocation2 + $0x170] sm:$0xff] }
 0x11d   : > { %1591 = vst.msk [vmem:[%s2378_s21 + $0x130] sm:$0xff] %vm272_vm3, %v1527_v7  ;;  %v1464_v17 = vadd.f32 %v2367_v34, %v1393_v12  ;;  %1328 = vst.msk [vmem:[#allocation2 + $0x148] sm:$0xff] %vm272_vm3, %v1263_v9  ;;  %v1007_v18 = vpop.f32.mrf.mxu0  ;;  %v1135_v19 = vpop.f32.mrf.mxu1 }
 0x11e   : > { %v1496_v20 = vmax.f32 %v1432_v16, 0.0  ;;  %v1232_v22 = vadd.f32 %v1007_v18, %v347_v10  ;;  %v1264_v23 = vadd.f32 %v1135_v19, %v379_v15 }
 0x11f   : > { %v1528_v21 = vmax.f32 %v1464_v17, 0.0  ;;  %v1362_v25 = vld [vmem:[#allocation2 + $0x40] sm:$0xff]  ;;  %v1009_v27 = vpop.f32.mrf.mxu0  ;;  %v1137_v28 = vpop.f32.mrf.mxu1  ;;  %v352_v17 = vld [vmem:[#allocation2 + $0x78] sm:$0xff] }
 0x120   : > { %v1394_v26 = vld [vmem:[#allocation2 + $0x140] sm:$0xff]  ;;  %1560 = vst.msk [vmem:[%s2378_s21 + $0x38] sm:$0xff] %vm272_vm3, %v1496_v20  ;;  %v1433_v30 = vadd.f32 %v2367_v34, %v1362_v25  ;;  %1297 = vst.msk [vmem:[#allocation2 + $0x50] sm:$0xff] %vm272_vm3, %v1232_v22  ;;  %v384_v22 = vld [vmem:[#allocation2 + $0x178] sm:$0xff] }
 0x121   : > { %1592 = vst.msk [vmem:[%s2378_s21 + $0x138] sm:$0xff] %vm272_vm3, %v1528_v21  ;;  %v1465_v31 = vadd.f32 %v2367_v34, %v1394_v26  ;;  %1329 = vst.msk [vmem:[#allocation2 + $0x150] sm:$0xff] %vm272_vm3, %v1264_v23  ;;  %v1010_v32 = vpop.f32.mrf.mxu0  ;;  %v1138_v33 = vpop.f32.mrf.mxu1 }
 0x122   : > { %v1497_v35 = vmax.f32 %v1433_v30, 0.0  ;;  %v1233_v37 = vadd.f32 %v1010_v32, %v348_v24  ;;  %v1265_v38 = vadd.f32 %v1138_v33, %v380_v29 }
 0x123   : > { %v1529_v36 = vmax.f32 %v1465_v31, 0.0  ;;  %v1363_v40 = vld [vmem:[#allocation2 + $0x48] sm:$0xff]  ;;  %v1012_v42 = vpop.f32.mrf.mxu0  ;;  %v1140_v43 = vpop.f32.mrf.mxu1  ;;  %v353_v31 = vld [vmem:[#allocation2 + $0x80] sm:$0xff] }
 0x124   : > { %v1395_v41 = vld [vmem:[#allocation2 + $0x148] sm:$0xff]  ;;  %1561 = vst.msk [vmem:[%s2378_s21 + $0x40] sm:$0xff] %vm272_vm3, %v1497_v35  ;;  %v1434_v45 = vadd.f32 %v2367_v34, %v1363_v40  ;;  %1298 = vst.msk [vmem:[#allocation2 + $0x58] sm:$0xff] %vm272_vm3, %v1233_v37  ;;  %v385_v37 = vld [vmem:[#allocation2 + $0x180] sm:$0xff] }
 0x125   : > { %1593 = vst.msk [vmem:[%s2378_s21 + $0x140] sm:$0xff] %vm272_vm3, %v1529_v36  ;;  %v1466_v46 = vadd.f32 %v2367_v34, %v1395_v41  ;;  %1330 = vst.msk [vmem:[#allocation2 + $0x158] sm:$0xff] %vm272_vm3, %v1265_v38  ;;  %v1015_v47 = vpop.f32.mrf.mxu0  ;;  %v1143_v48 = vpop.f32.mrf.mxu1 }
 0x126   : > { %v1498_v49 = vmax.f32 %v1434_v45, 0.0  ;;  %v1234_v51 = vadd.f32 %v1015_v47, %v349_v39  ;;  %v1266_v52 = vadd.f32 %v1143_v48, %v381_v44 }
 0x127   : > { %v1530_v50 = vmax.f32 %v1466_v46, 0.0  ;;  %v1364_v54 = vld [vmem:[#allocation2 + $0x50] sm:$0xff]  ;;  %v1017_v56 = vpop.f32.mrf.mxu0  ;;  %v1145_v57 = vpop.f32.mrf.mxu1  ;;  %v354_v46 = vld [vmem:[#allocation2 + $0x88] sm:$0xff] }
 0x128   : > { %v1396_v55 = vld [vmem:[#allocation2 + $0x150] sm:$0xff]  ;;  %1562 = vst.msk [vmem:[%s2378_s21 + $0x48] sm:$0xff] %vm272_vm3, %v1498_v49  ;;  %v1435_v59 = vadd.f32 %v2367_v34, %v1364_v54  ;;  %1299 = vst.msk [vmem:[#allocation2 + $0x60] sm:$0xff] %vm272_vm3, %v1234_v51  ;;  %v386_v51 = vld [vmem:[#allocation2 + $0x188] sm:$0xff] }
 0x129   : > { %1594 = vst.msk [vmem:[%s2378_s21 + $0x148] sm:$0xff] %vm272_vm3, %v1530_v50  ;;  %v1467_v60 = vadd.f32 %v2367_v34, %v1396_v55  ;;  %1331 = vst.msk [vmem:[#allocation2 + $0x160] sm:$0xff] %vm272_vm3, %v1266_v52  ;;  %v1018_v61 = vpop.f32.mrf.mxu0  ;;  %v1146_v62 = vpop.f32.mrf.mxu1 }
 0x12a   : > { %v1499_v63 = vmax.f32 %v1435_v59, 0.0  ;;  %v1235_v1 = vadd.f32 %v1018_v61, %v350_v53  ;;  %v1267_v2 = vadd.f32 %v1146_v62, %v382_v58 }
 0x12b   : > { %v1531_v0 = vmax.f32 %v1467_v60, 0.0  ;;  %v1365_v4 = vld [vmem:[#allocation2 + $0x58] sm:$0xff]  ;;  %v1020_v6 = vpop.f32.mrf.mxu0  ;;  %v1148_v7 = vpop.f32.mrf.mxu1  ;;  %v355_v60 = vld [vmem:[#allocation2 + $0x90] sm:$0xff] }
 0x12c   : > { %v1397_v5 = vld [vmem:[#allocation2 + $0x158] sm:$0xff]  ;;  %1563 = vst.msk [vmem:[%s2378_s21 + $0x50] sm:$0xff] %vm272_vm3, %v1499_v63  ;;  %v1436_v9 = vadd.f32 %v2367_v34, %v1365_v4  ;;  %1300 = vst.msk [vmem:[#allocation2 + $0x68] sm:$0xff] %vm272_vm3, %v1235_v1  ;;  %v387_v1 = vld [vmem:[#allocation2 + $0x190] sm:$0xff] }
 0x12d   : > { %1595 = vst.msk [vmem:[%s2378_s21 + $0x150] sm:$0xff] %vm272_vm3, %v1531_v0  ;;  %v1468_v10 = vadd.f32 %v2367_v34, %v1397_v5  ;;  %1332 = vst.msk [vmem:[#allocation2 + $0x168] sm:$0xff] %vm272_vm3, %v1267_v2  ;;  %v1023_v11 = vpop.f32.mrf.mxu0  ;;  %v1151_v12 = vpop.f32.mrf.mxu1 }
 0x12e   : > { %v1500_v13 = vmax.f32 %v1436_v9, 0.0  ;;  %v1236_v15 = vadd.f32 %v1023_v11, %v351_v3  ;;  %v1268_v16 = vadd.f32 %v1151_v12, %v383_v8 }
 0x12f   : > { %v1532_v14 = vmax.f32 %v1468_v10, 0.0  ;;  %v1366_v18 = vld [vmem:[#allocation2 + $0x60] sm:$0xff]  ;;  %v1025_v20 = vpop.f32.mrf.mxu0  ;;  %v1153_v21 = vpop.f32.mrf.mxu1  ;;  %v356_v10 = vld [vmem:[#allocation2 + $0x98] sm:$0xff] }
 0x130   : > { %v1398_v19 = vld [vmem:[#allocation2 + $0x160] sm:$0xff]  ;;  %1564 = vst.msk [vmem:[%s2378_s21 + $0x58] sm:$0xff] %vm272_vm3, %v1500_v13  ;;  %v1437_v23 = vadd.f32 %v2367_v34, %v1366_v18  ;;  %1301 = vst.msk [vmem:[#allocation2 + $0x70] sm:$0xff] %vm272_vm3, %v1236_v15  ;;  %v388_v15 = vld [vmem:[#allocation2 + $0x198] sm:$0xff] }
 0x131   : > { %1596 = vst.msk [vmem:[%s2378_s21 + $0x158] sm:$0xff] %vm272_vm3, %v1532_v14  ;;  %v1469_v24 = vadd.f32 %v2367_v34, %v1398_v19  ;;  %1333 = vst.msk [vmem:[#allocation2 + $0x170] sm:$0xff] %vm272_vm3, %v1268_v16  ;;  %v1026_v25 = vpop.f32.mrf.mxu0  ;;  %v1154_v26 = vpop.f32.mrf.mxu1 }
 0x132   : > { %v1501_v27 = vmax.f32 %v1437_v23, 0.0  ;;  %v1237_v29 = vadd.f32 %v1026_v25, %v352_v17  ;;  %v1269_v30 = vadd.f32 %v1154_v26, %v384_v22 }
 0x133   : > { %v1533_v28 = vmax.f32 %v1469_v24, 0.0  ;;  %v1367_v32 = vld [vmem:[#allocation2 + $0x68] sm:$0xff]  ;;  %v1028_v35 = vpop.f32.mrf.mxu0  ;;  %v1156_v36 = vpop.f32.mrf.mxu1  ;;  %v357_v24 = vld [vmem:[#allocation2 + $0xa0] sm:$0xff] }
 0x134   : > { %v1399_v33 = vld [vmem:[#allocation2 + $0x168] sm:$0xff]  ;;  %1565 = vst.msk [vmem:[%s2378_s21 + $0x60] sm:$0xff] %vm272_vm3, %v1501_v27  ;;  %v1438_v38 = vadd.f32 %v2367_v34, %v1367_v32  ;;  %1302 = vst.msk [vmem:[#allocation2 + $0x78] sm:$0xff] %vm272_vm3, %v1237_v29  ;;  %v389_v29 = vld [vmem:[#allocation2 + $0x1a0] sm:$0xff] }
 0x135   : > { %1597 = vst.msk [vmem:[%s2378_s21 + $0x160] sm:$0xff] %vm272_vm3, %v1533_v28  ;;  %v1470_v39 = vadd.f32 %v2367_v34, %v1399_v33  ;;  %1334 = vst.msk [vmem:[#allocation2 + $0x178] sm:$0xff] %vm272_vm3, %v1269_v30  ;;  %v1031_v40 = vpop.f32.mrf.mxu0  ;;  %v1159_v41 = vpop.f32.mrf.mxu1 }
 0x136   : > { %v1502_v42 = vmax.f32 %v1438_v38, 0.0  ;;  %v1238_v44 = vadd.f32 %v1031_v40, %v353_v31  ;;  %v1270_v45 = vadd.f32 %v1159_v41, %v385_v37 }
 0x137   : > { %v1534_v43 = vmax.f32 %v1470_v39, 0.0  ;;  %v1368_v47 = vld [vmem:[#allocation2 + $0x70] sm:$0xff]  ;;  %v1033_v49 = vpop.f32.mrf.mxu0  ;;  %v1161_v50 = vpop.f32.mrf.mxu1  ;;  %v358_v39 = vld [vmem:[#allocation2 + $0xa8] sm:$0xff] }
 0x138   : > { %v1400_v48 = vld [vmem:[#allocation2 + $0x170] sm:$0xff]  ;;  %1566 = vst.msk [vmem:[%s2378_s21 + $0x68] sm:$0xff] %vm272_vm3, %v1502_v42  ;;  %v1439_v52 = vadd.f32 %v2367_v34, %v1368_v47  ;;  %1303 = vst.msk [vmem:[#allocation2 + $0x80] sm:$0xff] %vm272_vm3, %v1238_v44  ;;  %v390_v44 = vld [vmem:[#allocation2 + $0x1a8] sm:$0xff] }
 0x139   : > { %1598 = vst.msk [vmem:[%s2378_s21 + $0x168] sm:$0xff] %vm272_vm3, %v1534_v43  ;;  %v1471_v53 = vadd.f32 %v2367_v34, %v1400_v48  ;;  %1335 = vst.msk [vmem:[#allocation2 + $0x180] sm:$0xff] %vm272_vm3, %v1270_v45  ;;  %v1034_v54 = vpop.f32.mrf.mxu0  ;;  %v1162_v55 = vpop.f32.mrf.mxu1 }
 0x13a   : > { %v1503_v56 = vmax.f32 %v1439_v52, 0.0  ;;  %v1239_v58 = vadd.f32 %v1034_v54, %v354_v46  ;;  %v1271_v59 = vadd.f32 %v1162_v55, %v386_v51 }
 0x13b   : > { %v1535_v57 = vmax.f32 %v1471_v53, 0.0  ;;  %v1369_v61 = vld [vmem:[#allocation2 + $0x78] sm:$0xff]  ;;  %v1036_v63 = vpop.f32.mrf.mxu0  ;;  %v1164_v0 = vpop.f32.mrf.mxu1  ;;  %v359_v53 = vld [vmem:[#allocation2 + $0xb0] sm:$0xff] }
 0x13c   : > { %v1401_v62 = vld [vmem:[#allocation2 + $0x178] sm:$0xff]  ;;  %1567 = vst.msk [vmem:[%s2378_s21 + $0x70] sm:$0xff] %vm272_vm3, %v1503_v56  ;;  %v1440_v2 = vadd.f32 %v2367_v34, %v1369_v61  ;;  %1304 = vst.msk [vmem:[#allocation2 + $0x88] sm:$0xff] %vm272_vm3, %v1239_v58  ;;  %v391_v58 = vld [vmem:[#allocation2 + $0x1b0] sm:$0xff] }
 0x13d   : > { %1599 = vst.msk [vmem:[%s2378_s21 + $0x170] sm:$0xff] %vm272_vm3, %v1535_v57  ;;  %v1472_v3 = vadd.f32 %v2367_v34, %v1401_v62  ;;  %1336 = vst.msk [vmem:[#allocation2 + $0x188] sm:$0xff] %vm272_vm3, %v1271_v59  ;;  %v1039_v4 = vpop.f32.mrf.mxu0  ;;  %v1167_v5 = vpop.f32.mrf.mxu1 }
 0x13e   : > { %v1504_v6 = vmax.f32 %v1440_v2, 0.0  ;;  %v1240_v8 = vadd.f32 %v1039_v4, %v355_v60  ;;  %v1272_v9 = vadd.f32 %v1167_v5, %v387_v1 }
 0x13f   : > { %v1536_v7 = vmax.f32 %v1472_v3, 0.0  ;;  %v1370_v11 = vld [vmem:[#allocation2 + $0x80] sm:$0xff]  ;;  %v1041_v13 = vpop.f32.mrf.mxu0  ;;  %v1169_v14 = vpop.f32.mrf.mxu1  ;;  %v360_v3 = vld [vmem:[#allocation2 + $0xb8] sm:$0xff] }
 0x140   : > { %v1402_v12 = vld [vmem:[#allocation2 + $0x180] sm:$0xff]  ;;  %1568 = vst.msk [vmem:[%s2378_s21 + $0x78] sm:$0xff] %vm272_vm3, %v1504_v6  ;;  %v1441_v16 = vadd.f32 %v2367_v34, %v1370_v11  ;;  %1305 = vst.msk [vmem:[#allocation2 + $0x90] sm:$0xff] %vm272_vm3, %v1240_v8  ;;  %v392_v8 = vld [vmem:[#allocation2 + $0x1b8] sm:$0xff] }
 0x141   : > { %1600 = vst.msk [vmem:[%s2378_s21 + $0x178] sm:$0xff] %vm272_vm3, %v1536_v7  ;;  %v1473_v17 = vadd.f32 %v2367_v34, %v1402_v12  ;;  %1337 = vst.msk [vmem:[#allocation2 + $0x190] sm:$0xff] %vm272_vm3, %v1272_v9  ;;  %v1042_v18 = vpop.f32.mrf.mxu0  ;;  %v1170_v19 = vpop.f32.mrf.mxu1 }
 0x142   : > { %v1505_v20 = vmax.f32 %v1441_v16, 0.0  ;;  %v1241_v22 = vadd.f32 %v1042_v18, %v356_v10  ;;  %v1273_v23 = vadd.f32 %v1170_v19, %v388_v15 }
 0x143   : > { %v1537_v21 = vmax.f32 %v1473_v17, 0.0  ;;  %v1371_v25 = vld [vmem:[#allocation2 + $0x88] sm:$0xff]  ;;  %v1044_v27 = vpop.f32.mrf.mxu0  ;;  %v1172_v28 = vpop.f32.mrf.mxu1  ;;  %v361_v17 = vld [vmem:[#allocation2 + $0xc0] sm:$0xff] }
 0x144   : > { %v1403_v26 = vld [vmem:[#allocation2 + $0x188] sm:$0xff]  ;;  %1569 = vst.msk [vmem:[%s2378_s21 + $0x80] sm:$0xff] %vm272_vm3, %v1505_v20  ;;  %v1442_v30 = vadd.f32 %v2367_v34, %v1371_v25  ;;  %1306 = vst.msk [vmem:[#allocation2 + $0x98] sm:$0xff] %vm272_vm3, %v1241_v22  ;;  %v393_v22 = vld [vmem:[#allocation2 + $0x1c0] sm:$0xff] }
 0x145   : > { %1601 = vst.msk [vmem:[%s2378_s21 + $0x180] sm:$0xff] %vm272_vm3, %v1537_v21  ;;  %v1474_v31 = vadd.f32 %v2367_v34, %v1403_v26  ;;  %1338 = vst.msk [vmem:[#allocation2 + $0x198] sm:$0xff] %vm272_vm3, %v1273_v23  ;;  %v1047_v32 = vpop.f32.mrf.mxu0  ;;  %v1175_v33 = vpop.f32.mrf.mxu1 }
 0x146   : > { %v1506_v35 = vmax.f32 %v1442_v30, 0.0  ;;  %v1242_v37 = vadd.f32 %v1047_v32, %v357_v24  ;;  %v1274_v38 = vadd.f32 %v1175_v33, %v389_v29 }
 0x147   : > { %v1538_v36 = vmax.f32 %v1474_v31, 0.0  ;;  %v1372_v40 = vld [vmem:[#allocation2 + $0x90] sm:$0xff]  ;;  %v1049_v42 = vpop.f32.mrf.mxu0  ;;  %v1177_v43 = vpop.f32.mrf.mxu1  ;;  %v362_v31 = vld [vmem:[#allocation2 + $0xc8] sm:$0xff] }
 0x148   : > { %v1404_v41 = vld [vmem:[#allocation2 + $0x190] sm:$0xff]  ;;  %1570 = vst.msk [vmem:[%s2378_s21 + $0x88] sm:$0xff] %vm272_vm3, %v1506_v35  ;;  %v1443_v45 = vadd.f32 %v2367_v34, %v1372_v40  ;;  %1307 = vst.msk [vmem:[#allocation2 + $0xa0] sm:$0xff] %vm272_vm3, %v1242_v37  ;;  %v394_v37 = vld [vmem:[#allocation2 + $0x1c8] sm:$0xff] }
 0x149   : > { %1602 = vst.msk [vmem:[%s2378_s21 + $0x188] sm:$0xff] %vm272_vm3, %v1538_v36  ;;  %v1475_v46 = vadd.f32 %v2367_v34, %v1404_v41  ;;  %1339 = vst.msk [vmem:[#allocation2 + $0x1a0] sm:$0xff] %vm272_vm3, %v1274_v38  ;;  %v1050_v47 = vpop.f32.mrf.mxu0  ;;  %v1178_v48 = vpop.f32.mrf.mxu1 }
 0x14a   : > { %v1507_v49 = vmax.f32 %v1443_v45, 0.0  ;;  %v1243_v51 = vadd.f32 %v1050_v47, %v358_v39  ;;  %v1275_v52 = vadd.f32 %v1178_v48, %v390_v44 }
 0x14b   : > { %v1539_v50 = vmax.f32 %v1475_v46, 0.0  ;;  %v1373_v54 = vld [vmem:[#allocation2 + $0x98] sm:$0xff]  ;;  %v1052_v56 = vpop.f32.mrf.mxu0  ;;  %v1180_v57 = vpop.f32.mrf.mxu1  ;;  %v363_v46 = vld [vmem:[#allocation2 + $0xd0] sm:$0xff] }
 0x14c   : > { %v1405_v55 = vld [vmem:[#allocation2 + $0x198] sm:$0xff]  ;;  %1571 = vst.msk [vmem:[%s2378_s21 + $0x90] sm:$0xff] %vm272_vm3, %v1507_v49  ;;  %v1444_v59 = vadd.f32 %v2367_v34, %v1373_v54  ;;  %1308 = vst.msk [vmem:[#allocation2 + $0xa8] sm:$0xff] %vm272_vm3, %v1243_v51  ;;  %v395_v51 = vld [vmem:[#allocation2 + $0x1d0] sm:$0xff] }
 0x14d   : > { %1603 = vst.msk [vmem:[%s2378_s21 + $0x190] sm:$0xff] %vm272_vm3, %v1539_v50  ;;  %v1476_v60 = vadd.f32 %v2367_v34, %v1405_v55  ;;  %1340 = vst.msk [vmem:[#allocation2 + $0x1a8] sm:$0xff] %vm272_vm3, %v1275_v52  ;;  %v1055_v61 = vpop.f32.mrf.mxu0  ;;  %v1183_v62 = vpop.f32.mrf.mxu1 }
 0x14e   : > { %v1508_v63 = vmax.f32 %v1444_v59, 0.0  ;;  %v1244_v1 = vadd.f32 %v1055_v61, %v359_v53  ;;  %v1276_v2 = vadd.f32 %v1183_v62, %v391_v58 }
 0x14f   : > { %v1540_v0 = vmax.f32 %v1476_v60, 0.0  ;;  %v1374_v4 = vld [vmem:[#allocation2 + $0xa0] sm:$0xff]  ;;  %v1057_v6 = vpop.f32.mrf.mxu0  ;;  %v1185_v7 = vpop.f32.mrf.mxu1  ;;  %v364_v60 = vld [vmem:[#allocation2 + $0xd8] sm:$0xff] }
 0x150   : > { %v1406_v5 = vld [vmem:[#allocation2 + $0x1a0] sm:$0xff]  ;;  %1572 = vst.msk [vmem:[%s2378_s21 + $0x98] sm:$0xff] %vm272_vm3, %v1508_v63  ;;  %v1445_v9 = vadd.f32 %v2367_v34, %v1374_v4  ;;  %1309 = vst.msk [vmem:[#allocation2 + $0xb0] sm:$0xff] %vm272_vm3, %v1244_v1  ;;  %v396_v1 = vld [vmem:[#allocation2 + $0x1d8] sm:$0xff] }
 0x151   : > { %1604 = vst.msk [vmem:[%s2378_s21 + $0x198] sm:$0xff] %vm272_vm3, %v1540_v0  ;;  %v1477_v10 = vadd.f32 %v2367_v34, %v1406_v5  ;;  %1341 = vst.msk [vmem:[#allocation2 + $0x1b0] sm:$0xff] %vm272_vm3, %v1276_v2  ;;  %v1058_v11 = vpop.f32.mrf.mxu0  ;;  %v1186_v12 = vpop.f32.mrf.mxu1 }
 0x152   : > { %v1509_v13 = vmax.f32 %v1445_v9, 0.0  ;;  %v1245_v15 = vadd.f32 %v1058_v11, %v360_v3  ;;  %v1277_v16 = vadd.f32 %v1186_v12, %v392_v8 }
 0x153   : > { %v1541_v14 = vmax.f32 %v1477_v10, 0.0  ;;  %v1375_v18 = vld [vmem:[#allocation2 + $0xa8] sm:$0xff]  ;;  %v1060_v20 = vpop.f32.mrf.mxu0  ;;  %v1188_v21 = vpop.f32.mrf.mxu1  ;;  %v365_v10 = vld [vmem:[#allocation2 + $0xe0] sm:$0xff] }
 0x154   : > { %v1407_v19 = vld [vmem:[#allocation2 + $0x1a8] sm:$0xff]  ;;  %1573 = vst.msk [vmem:[%s2378_s21 + $0xa0] sm:$0xff] %vm272_vm3, %v1509_v13  ;;  %v1446_v23 = vadd.f32 %v2367_v34, %v1375_v18  ;;  %1310 = vst.msk [vmem:[#allocation2 + $0xb8] sm:$0xff] %vm272_vm3, %v1245_v15  ;;  %v397_v15 = vld [vmem:[#allocation2 + $0x1e0] sm:$0xff] }
 0x155   : > { %1605 = vst.msk [vmem:[%s2378_s21 + $0x1a0] sm:$0xff] %vm272_vm3, %v1541_v14  ;;  %v1478_v24 = vadd.f32 %v2367_v34, %v1407_v19  ;;  %1342 = vst.msk [vmem:[#allocation2 + $0x1b8] sm:$0xff] %vm272_vm3, %v1277_v16  ;;  %v1063_v25 = vpop.f32.mrf.mxu0  ;;  %v1191_v26 = vpop.f32.mrf.mxu1 }
 0x156   : > { %v1510_v27 = vmax.f32 %v1446_v23, 0.0  ;;  %v1246_v29 = vadd.f32 %v1063_v25, %v361_v17  ;;  %v1278_v30 = vadd.f32 %v1191_v26, %v393_v22 }
 0x157   : > { %v1542_v28 = vmax.f32 %v1478_v24, 0.0  ;;  %v1376_v32 = vld [vmem:[#allocation2 + $0xb0] sm:$0xff]  ;;  %v1065_v35 = vpop.f32.mrf.mxu0  ;;  %v1193_v36 = vpop.f32.mrf.mxu1  ;;  %v366_v24 = vld [vmem:[#allocation2 + $0xe8] sm:$0xff] }
 0x158   : > { %v1408_v33 = vld [vmem:[#allocation2 + $0x1b0] sm:$0xff]  ;;  %1574 = vst.msk [vmem:[%s2378_s21 + $0xa8] sm:$0xff] %vm272_vm3, %v1510_v27  ;;  %v1447_v38 = vadd.f32 %v2367_v34, %v1376_v32  ;;  %1311 = vst.msk [vmem:[#allocation2 + $0xc0] sm:$0xff] %vm272_vm3, %v1246_v29  ;;  %v398_v29 = vld [vmem:[#allocation2 + $0x1e8] sm:$0xff] }
 0x159   : > { %1606 = vst.msk [vmem:[%s2378_s21 + $0x1a8] sm:$0xff] %vm272_vm3, %v1542_v28  ;;  %v1479_v39 = vadd.f32 %v2367_v34, %v1408_v33  ;;  %1343 = vst.msk [vmem:[#allocation2 + $0x1c0] sm:$0xff] %vm272_vm3, %v1278_v30  ;;  %v1066_v40 = vpop.f32.mrf.mxu0  ;;  %v1194_v41 = vpop.f32.mrf.mxu1 }
 0x15a   : > { %v1511_v42 = vmax.f32 %v1447_v38, 0.0  ;;  %v1247_v44 = vadd.f32 %v1066_v40, %v362_v31  ;;  %v1279_v45 = vadd.f32 %v1194_v41, %v394_v37 }
 0x15b   : > { %v1543_v43 = vmax.f32 %v1479_v39, 0.0  ;;  %v1377_v47 = vld [vmem:[#allocation2 + $0xb8] sm:$0xff]  ;;  %v1068_v49 = vpop.f32.mrf.mxu0  ;;  %v1196_v50 = vpop.f32.mrf.mxu1  ;;  %v367_v39 = vld [vmem:[#allocation2 + $0xf0] sm:$0xff] }
 0x15c   : > { %v1409_v48 = vld [vmem:[#allocation2 + $0x1b8] sm:$0xff]  ;;  %1575 = vst.msk [vmem:[%s2378_s21 + $0xb0] sm:$0xff] %vm272_vm3, %v1511_v42  ;;  %v1448_v52 = vadd.f32 %v2367_v34, %v1377_v47  ;;  %1312 = vst.msk [vmem:[#allocation2 + $0xc8] sm:$0xff] %vm272_vm3, %v1247_v44  ;;  %v399_v44 = vld [vmem:[#allocation2 + $0x1f0] sm:$0xff] }
 0x15d   : > { %1607 = vst.msk [vmem:[%s2378_s21 + $0x1b0] sm:$0xff] %vm272_vm3, %v1543_v43  ;;  %v1480_v53 = vadd.f32 %v2367_v34, %v1409_v48  ;;  %1344 = vst.msk [vmem:[#allocation2 + $0x1c8] sm:$0xff] %vm272_vm3, %v1279_v45  ;;  %v1071_v54 = vpop.f32.mrf.mxu0  ;;  %v1199_v55 = vpop.f32.mrf.mxu1 }
 0x15e   : > { %v1512_v56 = vmax.f32 %v1448_v52, 0.0  ;;  %v1248_v58 = vadd.f32 %v1071_v54, %v363_v46  ;;  %v1280_v59 = vadd.f32 %v1199_v55, %v395_v51 }
 0x15f   : > { %v1544_v57 = vmax.f32 %v1480_v53, 0.0  ;;  %v1378_v61 = vld [vmem:[#allocation2 + $0xc0] sm:$0xff]  ;;  %v1073_v63 = vpop.f32.mrf.mxu0  ;;  %v1201_v0 = vpop.f32.mrf.mxu1  ;;  %v368_v53 = vld [vmem:[#allocation2 + $0xf8] sm:$0xff] }
 0x160   : > { %v1410_v62 = vld [vmem:[#allocation2 + $0x1c0] sm:$0xff]  ;;  %1576 = vst.msk [vmem:[%s2378_s21 + $0xb8] sm:$0xff] %vm272_vm3, %v1512_v56  ;;  %v1449_v2 = vadd.f32 %v2367_v34, %v1378_v61  ;;  %1313 = vst.msk [vmem:[#allocation2 + $0xd0] sm:$0xff] %vm272_vm3, %v1248_v58  ;;  %v400_v58 = vld [vmem:[#allocation2 + $0x1f8] sm:$0xff] }
 0x161   : > { %1608 = vst.msk [vmem:[%s2378_s21 + $0x1b8] sm:$0xff] %vm272_vm3, %v1544_v57  ;;  %v1481_v3 = vadd.f32 %v2367_v34, %v1410_v62  ;;  %1345 = vst.msk [vmem:[#allocation2 + $0x1d0] sm:$0xff] %vm272_vm3, %v1280_v59  ;;  %v1074_v4 = vpop.f32.mrf.mxu0  ;;  %v1202_v5 = vpop.f32.mrf.mxu1 }
 0x162   : > { %v1513_v6 = vmax.f32 %v1449_v2, 0.0  ;;  %v1249_v8 = vadd.f32 %v1074_v4, %v364_v60  ;;  %v1281_v9 = vadd.f32 %v1202_v5, %v396_v1 }
 0x163   : > { %v1545_v7 = vmax.f32 %v1481_v3, 0.0  ;;  %v1379_v11 = vld [vmem:[#allocation2 + $0xc8] sm:$0xff]  ;;  %v1076_v13 = vpop.f32.mrf.mxu0  ;;  %v1204_v14 = vpop.f32.mrf.mxu1 }
 0x164   : > { %v1411_v12 = vld [vmem:[#allocation2 + $0x1c8] sm:$0xff]  ;;  %1577 = vst.msk [vmem:[%s2378_s21 + $0xc0] sm:$0xff] %vm272_vm3, %v1513_v6  ;;  %v1450_v16 = vadd.f32 %v2367_v34, %v1379_v11  ;;  %1314 = vst.msk [vmem:[#allocation2 + $0xd8] sm:$0xff] %vm272_vm3, %v1249_v8 }
 0x165   : > { %1609 = vst.msk [vmem:[%s2378_s21 + $0x1c0] sm:$0xff] %vm272_vm3, %v1545_v7  ;;  %v1482_v17 = vadd.f32 %v2367_v34, %v1411_v12  ;;  %1346 = vst.msk [vmem:[#allocation2 + $0x1d8] sm:$0xff] %vm272_vm3, %v1281_v9  ;;  %v1079_v18 = vpop.f32.mrf.mxu0  ;;  %v1207_v19 = vpop.f32.mrf.mxu1 }
 0x166   : > { %v1514_v20 = vmax.f32 %v1450_v16, 0.0  ;;  %v1250_v22 = vadd.f32 %v1079_v18, %v365_v10  ;;  %v1282_v23 = vadd.f32 %v1207_v19, %v397_v15 }
 0x167   : > { %v1546_v21 = vmax.f32 %v1482_v17, 0.0  ;;  %v1380_v25 = vld [vmem:[#allocation2 + $0xd0] sm:$0xff]  ;;  %v1081_v27 = vpop.f32.mrf.mxu0  ;;  %v1209_v28 = vpop.f32.mrf.mxu1 }
 0x168   : > { %v1412_v26 = vld [vmem:[#allocation2 + $0x1d0] sm:$0xff]  ;;  %1578 = vst.msk [vmem:[%s2378_s21 + $0xc8] sm:$0xff] %vm272_vm3, %v1514_v20  ;;  %v1451_v30 = vadd.f32 %v2367_v34, %v1380_v25  ;;  %1315 = vst.msk [vmem:[#allocation2 + $0xe0] sm:$0xff] %vm272_vm3, %v1250_v22 }
 0x169   : > { %1610 = vst.msk [vmem:[%s2378_s21 + $0x1c8] sm:$0xff] %vm272_vm3, %v1546_v21  ;;  %v1483_v31 = vadd.f32 %v2367_v34, %v1412_v26  ;;  %1347 = vst.msk [vmem:[#allocation2 + $0x1e0] sm:$0xff] %vm272_vm3, %v1282_v23  ;;  %v1082_v32 = vpop.f32.mrf.mxu0  ;;  %v1210_v33 = vpop.f32.mrf.mxu1 }
 0x16a   : > { %v1515_v35 = vmax.f32 %v1451_v30, 0.0  ;;  %v1251_v37 = vadd.f32 %v1082_v32, %v366_v24  ;;  %v1283_v38 = vadd.f32 %v1210_v33, %v398_v29 }
 0x16b   : > { %v1547_v36 = vmax.f32 %v1483_v31, 0.0  ;;  %v1381_v40 = vld [vmem:[#allocation2 + $0xd8] sm:$0xff]  ;;  %v1084_v42 = vpop.f32.mrf.mxu0  ;;  %v1212_v43 = vpop.f32.mrf.mxu1 }
 0x16c   : > { %v1413_v41 = vld [vmem:[#allocation2 + $0x1d8] sm:$0xff]  ;;  %1579 = vst.msk [vmem:[%s2378_s21 + $0xd0] sm:$0xff] %vm272_vm3, %v1515_v35  ;;  %v1452_v45 = vadd.f32 %v2367_v34, %v1381_v40  ;;  %1316 = vst.msk [vmem:[#allocation2 + $0xe8] sm:$0xff] %vm272_vm3, %v1251_v37 }
 0x16d   : > { %1611 = vst.msk [vmem:[%s2378_s21 + $0x1d0] sm:$0xff] %vm272_vm3, %v1547_v36  ;;  %v1484_v46 = vadd.f32 %v2367_v34, %v1413_v41  ;;  %1348 = vst.msk [vmem:[#allocation2 + $0x1e8] sm:$0xff] %vm272_vm3, %v1283_v38  ;;  %v1087_v47 = vpop.f32.mrf.mxu0  ;;  %v1215_v48 = vpop.f32.mrf.mxu1  ;;  %v2006_v34 = vld [vmem:[%s2634_s2] ss:$0 sm:$0xff] }
 0x16e   : > { %v1516_v49 = vmax.f32 %v1452_v45, 0.0  ;;  %v1252_v51 = vadd.f32 %v1087_v47, %v367_v39  ;;  %v1284_v52 = vadd.f32 %v1215_v48, %v399_v44 }
 0x16f   : > { %v1548_v50 = vmax.f32 %v1484_v46, 0.0  ;;  %v1382_v54 = vld [vmem:[#allocation2 + $0xe0] sm:$0xff]  ;;  %v1089_v56 = vpop.f32.mrf.mxu0  ;;  %v1217_v57 = vpop.f32.mrf.mxu1 }
 0x170   : > { %v1414_v55 = vld [vmem:[#allocation2 + $0x1e0] sm:$0xff]  ;;  %1580 = vst.msk [vmem:[%s2378_s21 + $0xd8] sm:$0xff] %vm272_vm3, %v1516_v49  ;;  %v1453_v59 = vadd.f32 %v2006_v34, %v1382_v54  ;;  %1317 = vst.msk [vmem:[#allocation2 + $0xf0] sm:$0xff] %vm272_vm3, %v1252_v51 }
 0x171   : > { %1612 = vst.msk [vmem:[%s2378_s21 + $0x1d8] sm:$0xff] %vm272_vm3, %v1548_v50  ;;  %v1485_v60 = vadd.f32 %v2006_v34, %v1414_v55  ;;  %1349 = vst.msk [vmem:[#allocation2 + $0x1f0] sm:$0xff] %vm272_vm3, %v1284_v52  ;;  %v1090_v61 = vpop.f32.mrf.mxu0  ;;  %v1218_v62 = vpop.f32.mrf.mxu1 }
 0x172   : > { %v1517_v63 = vmax.f32 %v1453_v59, 0.0  ;;  %v1253_v1 = vadd.f32 %v1090_v61, %v368_v53  ;;  %v1285_v2 = vadd.f32 %v1218_v62, %v400_v58 }
 0x173   : > { %v1549_v0 = vmax.f32 %v1485_v60, 0.0  ;;  %v1383_v3 = vld [vmem:[#allocation2 + $0xe8] sm:$0xff]  ;;  %v1092_v5 = vpop.f32.mrf.mxu0  ;;  %v1220_v6 = vpop.f32.mrf.mxu1 }
 0x174   : > { %v1415_v4 = vld [vmem:[#allocation2 + $0x1e8] sm:$0xff]  ;;  %1581 = vst.msk [vmem:[%s2378_s21 + $0xe0] sm:$0xff] %vm272_vm3, %v1517_v63  ;;  %v1454_v7 = vadd.f32 %v2006_v34, %v1383_v3  ;;  %1318 = vst.msk [vmem:[#allocation2 + $0xf8] sm:$0xff] %vm272_vm3, %v1253_v1 }
 0x175   : > { %1613 = vst.msk [vmem:[%s2378_s21 + $0x1e0] sm:$0xff] %vm272_vm3, %v1549_v0  ;;  %v1486_v8 = vadd.f32 %v2006_v34, %v1415_v4  ;;  %1350 = vst.msk [vmem:[#allocation2 + $0x1f8] sm:$0xff] %vm272_vm3, %v1285_v2 }
 0x176   : > { %v1518_v9 = vmax.f32 %v1454_v7, 0.0 }
 0x177   : > { %v1550_v10 = vmax.f32 %v1486_v8, 0.0  ;;  %v1384_v11 = vld [vmem:[#allocation2 + $0xf0] sm:$0xff] }
 0x178   : > { %v1416_v12 = vld [vmem:[#allocation2 + $0x1f0] sm:$0xff]  ;;  %1582 = vst.msk [vmem:[%s2378_s21 + $0xe8] sm:$0xff] %vm272_vm3, %v1518_v9  ;;  %v1455_v13 = vadd.f32 %v2006_v34, %v1384_v11 }
 0x179   : > { %1614 = vst.msk [vmem:[%s2378_s21 + $0x1e8] sm:$0xff] %vm272_vm3, %v1550_v10  ;;  %v1487_v14 = vadd.f32 %v2006_v34, %v1416_v12 }
 0x17a   : > { %v1519_v15 = vmax.f32 %v1455_v13, 0.0 }
 0x17b   : > { %v1551_v16 = vmax.f32 %v1487_v14, 0.0  ;;  %v1385_v17 = vld [vmem:[#allocation2 + $0xf8] sm:$0xff] }
 0x17c   : > { %v1417_v18 = vld [vmem:[#allocation2 + $0x1f8] sm:$0xff]  ;;  %1583 = vst.msk [vmem:[%s2378_s21 + $0xf0] sm:$0xff] %vm272_vm3, %v1519_v15  ;;  %v1456_v19 = vadd.f32 %v2006_v34, %v1385_v17 }
 0x17d   : > { %1615 = vst.msk [vmem:[%s2378_s21 + $0x1f0] sm:$0xff] %vm272_vm3, %v1551_v16  ;;  %v1488_v20 = vadd.f32 %v2006_v34, %v1417_v18 }
 0x17e   : > { %v1520_v21 = vmax.f32 %v1456_v19, 0.0 }
 0x17f   : > { %v1552_v22 = vmax.f32 %v1488_v20, 0.0 }
 0x180   : > { %1584 = vst.msk [vmem:[%s2378_s21 + $0xf8] sm:$0xff] %vm272_vm3, %v1520_v21 }
 0x181   : > { %1616 = vst.msk [vmem:[%s2378_s21 + $0x1f8] sm:$0xff] %vm272_vm3, %v1552_v22 }
 0x182 PF: > { %s13_s14 = sadd.s32 1, %s2029_s14   ;;  %s2636_s12 = smov %s2025_s13 }
 0x183   : > { %p10_p5 = scmp.ge.s32.totalorder %s13_s14, 6   ;;  %s2637_s13 = smov %s2639_s15 }
 0x185   :  { %12 = sbr.rel (!%p10_p5) target bundleno = 2 (0x2), region = 76 }

</bundles_post_ra>
